<compile_context>
chip_gen: v7x
topology: tpu7x:2x2x1
jax: 0.10.0
libtpu: 0.0.40
codegen_flags: <defaults>
</compile_context>

<pallas_src>
import functools
import math

import jax
import jax.numpy as jnp
from jax import lax
from jax.experimental import pallas as pl
from jax.experimental.pallas import tpu as pltpu


# ---------------------------------------------------------------------------
# small helpers
# ---------------------------------------------------------------------------

def _round_up(x, m):
    return ((x + m - 1) // m) * m


def _choose_m_tiling(M):
    """Return (Mp, TM, grid) with TM a multiple of 8 and Mp a multiple of TM."""
    Mp = _round_up(M, 8)
    TM = min(Mp, 512)
    Mp = _round_up(Mp, TM)
    return Mp, TM, Mp // TM


def _pad_rows(a, Mp):
    M = a.shape[0]
    if Mp == M:
        return a
    return jnp.pad(a, ((0, Mp - M), (0, 0)))


# ---------------------------------------------------------------------------
# Pallas kernels
# ---------------------------------------------------------------------------

def _mm_kernel(relu_in, relu_out, has_bias, *refs):
    """out_tile = maybe_relu(maybe_relu(a_tile) @ W + bias)."""
    if has_bias:
        a_ref, b_ref, bias_ref, o_ref = refs
    else:
        a_ref, b_ref, o_ref = refs
        bias_ref = None
    a = a_ref[...]                                   # (TM, K) bf16
    if relu_in:
        a = jnp.maximum(a, 0)
    acc = jnp.dot(a, b_ref[...], preferred_element_type=jnp.float32)   # (TM, Np) f32
    if has_bias:
        acc = acc + bias_ref[...]
    if relu_out:
        acc = jnp.maximum(acc, 0.0)
    o_ref[...] = acc.astype(o_ref.dtype)


def pallas_matmul(a, b_bf16, bias=None, relu_in=False, relu_out=False):
    """a: (M, K) any float dtype; b_bf16: (K, Np) bf16 (Np multiple of 128);
    bias: (1, Np) f32 or None. Returns (M, Np) f32. Tiled over M, weights resident."""
    M, K = a.shape
    K2, Np = b_bf16.shape
    assert K == K2 and Np % 128 == 0
    a = _pad_rows(a.astype(jnp.bfloat16), _choose_m_tiling(M)[0])
    Mp, TM, gm = _choose_m_tiling(M)

    has_bias = bias is not None
    kernel = functools.partial(_mm_kernel, relu_in, relu_out, has_bias)

    in_specs = [
        pl.BlockSpec((TM, K), lambda i: (i, 0)),
        pl.BlockSpec((K, Np), lambda i: (0, 0)),
    ]
    args = [a, b_bf16]
    if has_bias:
        in_specs.append(pl.BlockSpec((1, Np), lambda i: (0, 0)))
        args.append(bias)

    out = pl.pallas_call(
        kernel,
        out_shape=jax.ShapeDtypeStruct((Mp, Np), jnp.float32),
        grid=(gm,),
        in_specs=in_specs,
        out_specs=pl.BlockSpec((TM, Np), lambda i: (i, 0)),
        compiler_params=pltpu.CompilerParams(dimension_semantics=("parallel",)),
    )(*args)
    return out[:M]


def _res_kernel(p_ref, w3_ref, w1_ref, x_ref, o_ref):
    """Fused residual block: out = x + conv1x1(relu(conv3x3(relu(x)))).
    p_ref holds im2col patches of x (relu applied in-kernel; zero padding is
    relu-invariant). Intermediate (TM, Rp) lives in registers/VMEM only."""
    p = jnp.maximum(p_ref[...], 0)                                        # (TM, 9C) bf16
    h = jnp.dot(p, w3_ref[...], preferred_element_type=jnp.float32)      # (TM, Rp)
    h = jnp.maximum(h, 0.0).astype(jnp.bfloat16)
    h = jnp.dot(h, w1_ref[...], preferred_element_type=jnp.float32)      # (TM, Cp)
    o_ref[...] = x_ref[...] + h


def pallas_residual(patches, w3p, w1p, x_pad):
    """patches (M, 9C); w3p (9C, Rp) bf16; w1p (Rp, Cp) bf16; x_pad (M, Cp) f32."""
    M, K = patches.shape
    Rp = w3p.shape[1]
    Cp = w1p.shape[1]
    Mp, TM, gm = _choose_m_tiling(M)
    patches = _pad_rows(patches.astype(jnp.bfloat16), Mp)
    x_pad = _pad_rows(x_pad.astype(jnp.float32), Mp)

    out = pl.pallas_call(
        _res_kernel,
        out_shape=jax.ShapeDtypeStruct((Mp, Cp), jnp.float32),
        grid=(gm,),
        in_specs=[
            pl.BlockSpec((TM, K), lambda i: (i, 0)),
            pl.BlockSpec((K, Rp), lambda i: (0, 0)),
            pl.BlockSpec((Rp, Cp), lambda i: (0, 0)),
            pl.BlockSpec((TM, Cp), lambda i: (i, 0)),
        ],
        out_specs=pl.BlockSpec((TM, Cp), lambda i: (i, 0)),
        compiler_params=pltpu.CompilerParams(dimension_semantics=("parallel",)),
    )(patches, w3p, w1p, x_pad)
    return out[:M]


def _vq_kernel(commitment_cost, K, M, D, x_ref, e_ref, eq_ref, loss_ref):
    x = x_ref[...]        # (Mp, Dp) f32, zero-padded rows/cols
    emb = e_ref[...]      # (Kp, Dp) f32, zero-padded rows/cols
    Mp, Dp = x.shape
    Kp = emb.shape[0]

    x2 = jnp.sum(x * x, axis=1, keepdims=True)                        # (Mp, 1)
    e2 = jnp.sum(emb * emb, axis=1)[None, :]                           # (1, Kp)
    xe = jnp.dot(x, emb.T, preferred_element_type=jnp.float32)         # (Mp, Kp)
    dist = x2 + e2 - 2.0 * xe

    col = lax.broadcasted_iota(jnp.int32, (Mp, Kp), 1)
    dist = jnp.where(col < K, dist, jnp.float32(1e30))                 # mask padded codes

    # first-occurrence argmin via min + iota trick (matches torch.argmin)
    min_d = jnp.min(dist, axis=1, keepdims=True)
    idx = jnp.min(jnp.where(dist == min_d, col, Kp), axis=1, keepdims=True)
    one_hot = (col == idx).astype(jnp.float32)                         # (Mp, Kp)

    eq = jnp.dot(one_hot, emb, preferred_element_type=jnp.float32)     # (Mp, Dp)
    eq_ref[...] = eq

    row = lax.broadcasted_iota(jnp.int32, (Mp, Dp), 0)
    diff = jnp.where(row < M, eq - x, 0.0)                             # mask padded rows
    mse = jnp.sum(diff * diff) / (M * D)
    # loss = commitment_cost * e_loss + q_loss ; e_loss == q_loss numerically
    loss_ref[...] = jnp.reshape((1.0 + commitment_cost) * mse, (1, 1))


def pallas_vq(flat_x, emb, commitment_cost):
    M, D = flat_x.shape
    K = emb.shape[0]
    Mp = _round_up(M, 8)
    Dp = _round_up(D, 128)
    Kp = _round_up(K, 128)
    xpad = jnp.pad(flat_x.astype(jnp.float32), ((0, Mp - M), (0, Dp - D)))
    epad = jnp.pad(emb.astype(jnp.float32), ((0, Kp - K), (0, Dp - D)))
    kernel = functools.partial(_vq_kernel, commitment_cost, K, M, D)
    eq, loss = pl.pallas_call(
        kernel,
        out_shape=(jax.ShapeDtypeStruct((Mp, Dp), jnp.float32),
                   jax.ShapeDtypeStruct((1, 1), jnp.float32)),
        grid=(1,),
        in_specs=[pl.BlockSpec((Mp, Dp), lambda i: (0, 0)),
                  pl.BlockSpec((Kp, Dp), lambda i: (0, 0))],
        out_specs=(pl.BlockSpec((Mp, Dp), lambda i: (0, 0)),
                   pl.BlockSpec((1, 1), lambda i: (0, 0))),
    )(xpad, epad)
    return eq[:M, :D], loss[0, 0]


# ---------------------------------------------------------------------------
# Conv wrappers (NHWC, transpose-free im2col; matmul hot path in Pallas)
# ---------------------------------------------------------------------------

def im2col_nhwc(x, k, stride, pad):
    """x: (B, H, W, C) -> patches (B*Ho*Wo, k*k*C) ordered as (dy, dx, c)."""
    B, H, W, C = x.shape
    if k == 1 and stride == 1 and pad == 0:
        return x.reshape(B * H * W, C), H, W
    xp = jnp.pad(x, ((0, 0), (pad, pad), (pad, pad), (0, 0)))
    Ho = (H + 2 * pad - k) // stride + 1
    Wo = (W + 2 * pad - k) // stride + 1
    cols = []
    for dy in range(k):
        for dx in range(k):
            cols.append(xp[:, dy:dy + Ho * stride:stride, dx:dx + Wo * stride:stride, :])
    patches = jnp.concatenate(cols, axis=-1)          # (B, Ho, Wo, k*k*C)
    return patches.reshape(B * Ho * Wo, k * k * C), Ho, Wo


def _prep_conv_weight(w):
    """w: (Cout, Cin, kh, kw) torch layout -> ((kh*kw*Cin, Np) bf16, Np)."""
    Cout, Cin, kh, kw = w.shape
    wf = jnp.transpose(w, (2, 3, 1, 0)).reshape(kh * kw * Cin, Cout)
    Np = _round_up(Cout, 128)
    wf = jnp.pad(wf, ((0, 0), (0, Np - Cout))).astype(jnp.bfloat16)
    return wf, Np


def conv2d_nhwc(x, w, b, stride, pad, relu_in=False, relu_out=False):
    """x: (B, H, W, Cin) f32; w: (Cout, Cin, kh, kw) torch layout."""
    B, H, W, Cin = x.shape
    Cout = w.shape[0]
    kh = w.shape[2]
    patches, Ho, Wo = im2col_nhwc(x, kh, stride, pad)
    wf, Np = _prep_conv_weight(w)
    bias = None
    if b is not None:
        bias = jnp.pad(b.astype(jnp.float32), (0, Np - Cout)).reshape(1, Np)
    out = pallas_matmul(patches, wf, bias, relu_in=relu_in, relu_out=relu_out)
    return out[:, :Cout].reshape(B, Ho, Wo, Cout)


def residual_block_nhwc(x, w3, w1):
    """x + conv1x1(relu(conv3x3(relu(x)))) — one fused Pallas call, bias-free convs."""
    B, H, W, C = x.shape
    R = w3.shape[0]
    Rp = _round_up(R, 128)
    Cp = _round_up(C, 128)
    patches, _, _ = im2col_nhwc(x, 3, 1, 1)                      # (M, 9C)
    w3f = jnp.transpose(w3, (2, 3, 1, 0)).reshape(9 * C, R)
    w3p = jnp.pad(w3f, ((0, 0), (0, Rp - R))).astype(jnp.bfloat16)
    w1f = jnp.transpose(w1, (2, 3, 1, 0)).reshape(R, C)
    w1p = jnp.pad(w1f, ((0, Rp - R), (0, Cp - C))).astype(jnp.bfloat16)
    xf = jnp.pad(x.reshape(B * H * W, C), ((0, 0), (0, Cp - C)))
    out = pallas_residual(patches, w3p, w1p, xf)                 # (M, Cp)
    return out[:, :C].reshape(B, H, W, C)


def conv_transpose2d_nhwc(x, w, b, relu_out=False):
    """ConvTranspose2d(kernel=4, stride=2, padding=1) via sub-pixel decomposition.
    x: (B, H, W, Cin); w: (Cin, Cout, 4, 4) [torch ConvTranspose2d layout]."""
    B, H, W, Cin = x.shape
    Cout = w.shape[1]

    # 2x2 windows over the 1-padded input produce all four output phases.
    xp = jnp.pad(x, ((0, 0), (1, 1), (1, 1), (0, 0)))
    cols = []
    for dy in range(2):
        for dx in range(2):
            cols.append(xp[:, dy:dy + H + 1, dx:dx + W + 1, :])
    patches = jnp.concatenate(cols, axis=-1).reshape(B * (H + 1) * (W + 1), 4 * Cin)

    wt = jnp.transpose(w, (2, 3, 0, 1))                          # (kh, kw, Cin, Cout)
    KY = ((3, 1), (2, 0))                                        # tap indices per phase
    phase_ws = []
    for r in range(2):
        for c in range(2):
            wp = jnp.stack(
                [jnp.stack([wt[KY[r][dy], KY[c][dx]] for dx in range(2)], axis=0)
                 for dy in range(2)], axis=0)                    # (2, 2, Cin, Cout)
            phase_ws.append(wp.reshape(4 * Cin, Cout))
    wbig = jnp.stack(phase_ws, axis=1).reshape(4 * Cin, 4 * Cout)
    Np = _round_up(4 * Cout, 128)
    wbig = jnp.pad(wbig, ((0, 0), (0, Np - 4 * Cout))).astype(jnp.bfloat16)
    bias = jnp.pad(jnp.tile(b.astype(jnp.float32), 4), (0, Np - 4 * Cout)).reshape(1, Np)

    out = pallas_matmul(patches, wbig, bias, relu_in=False, relu_out=relu_out)
    out = out[:, :4 * Cout].reshape(B, H + 1, W + 1, 4, Cout)

    p00 = out[:, 0:H,     0:W,     0, :]
    p01 = out[:, 0:H,     1:W + 1, 1, :]
    p10 = out[:, 1:H + 1, 0:W,     2, :]
    p11 = out[:, 1:H + 1, 1:W + 1, 3, :]
    top = jnp.stack([p00, p01], axis=3)                          # (B, H, W, 2, C)
    bot = jnp.stack([p10, p11], axis=3)
    y = jnp.stack([top, bot], axis=2)                            # (B, H, 2, W, 2, C)
    return y.reshape(B, 2 * H, 2 * W, Cout)


# ---------------------------------------------------------------------------
# Model
# ---------------------------------------------------------------------------

def _uniform(key, shape, bound):
    return jax.random.uniform(key, shape, jnp.float32, -bound, bound)


def init_params(key, hidden_units, residual_layers, residual_hidden_units,
                num_embeddings, embeddings_dim):
    H, R, K, D = hidden_units, residual_hidden_units, num_embeddings, embeddings_dim
    keys = iter(jax.random.split(key, 64))

    def conv_param(cin, cout, k, bias=True):
        bound = 1.0 / math.sqrt(cin * k * k)
        w = _uniform(next(keys), (cout, cin, k, k), bound)
        b = _uniform(next(keys), (cout,), bound) if bias else None
        return w, b

    p = {}
    # Encoder (number_pre_conv = 4)
    p["enc1"] = conv_param(3, H // 2, 4)
    p["enc2"] = conv_param(H // 2, H, 4)
    p["enc3"] = conv_param(H, H, 3)
    p["enc_res"] = [(conv_param(H, R, 3, bias=False)[0],
                     conv_param(R, H, 1, bias=False)[0])
                    for _ in range(residual_layers)]
    # _before_z 1x1 conv
    p["before_z"] = conv_param(H, D, 1)
    # codebook: uniform(-1/K, 1/K) as in the reference
    p["emb"] = jax.random.uniform(next(keys), (K, D), jnp.float32, -1.0 / K, 1.0 / K)
    # Decoder (number_post_trans_conv = 2)
    p["dec1"] = conv_param(D, H, 3)
    p["dec_res"] = [(conv_param(H, R, 3, bias=False)[0],
                     conv_param(R, H, 1, bias=False)[0])
                    for _ in range(residual_layers)]
    b1 = 1.0 / math.sqrt(H * 4 * 4)
    p["dect1_w"] = _uniform(next(keys), (H, H // 2, 4, 4), b1)   # (Cin, Cout, kh, kw)
    p["dect1_b"] = _uniform(next(keys), (H // 2,), b1)
    b2 = 1.0 / math.sqrt((H // 2) * 4 * 4)
    p["dect2_w"] = _uniform(next(keys), (H // 2, 3, 4, 4), b2)
    p["dect2_b"] = _uniform(next(keys), (3,), b2)
    return p


def model_forward(params, x_nchw, commitment_cost):
    x = jnp.transpose(x_nchw, (0, 2, 3, 1))                      # NCHW -> NHWC once

    # --- Encoder ---
    h = conv2d_nhwc(x, *params["enc1"], stride=2, pad=1, relu_out=True)
    h = conv2d_nhwc(h, *params["enc2"], stride=2, pad=1, relu_out=True)
    h = conv2d_nhwc(h, *params["enc3"], stride=1, pad=1)
    for w3, w1 in params["enc_res"]:
        h = residual_block_nhwc(h, w3, w1)
    # final encoder ReLU fused into the 1x1 _before_z conv
    z = conv2d_nhwc(h, *params["before_z"], stride=1, pad=0, relu_in=True)  # (B,Hs,Ws,D)

    # --- VectorQuantize (faithful to `inputs.view(-1, D)` on the NCHW tensor) ---
    B, Hs, Ws, D = z.shape
    z_nchw = jnp.transpose(z, (0, 3, 1, 2))
    flat = z_nchw.reshape(-1, D)
    eq_flat, loss = pallas_vq(flat, params["emb"], commitment_cost)
    latent = jnp.transpose(eq_flat.reshape(B, D, Hs, Ws), (0, 2, 3, 1))     # NHWC

    # --- Decoder ---
    h = conv2d_nhwc(latent, *params["dec1"], stride=1, pad=1)
    for w3, w1 in params["dec_res"]:
        h = residual_block_nhwc(h, w3, w1)
    h = conv_transpose2d_nhwc(h, params["dect1_w"], params["dect1_b"], relu_out=True)
    recon = conv_transpose2d_nhwc(h, params["dect2_w"], params["dect2_b"])
    return loss, jnp.transpose(recon, (0, 3, 1, 2))              # back to NCHW


if __name__ == "__main__":
    hidden_units = 32
    residual_layers = 2
    residual_hidden_units = 16
    num_embeddings = 32
    embeddings_dim = 16
    commitment_cost = 0.25

    key = jax.random.PRNGKey(0)
    pkey, xkey = jax.random.split(key)
    params = init_params(pkey, hidden_units, residual_layers, residual_hidden_units,
                         num_embeddings, embeddings_dim)
    x = jax.random.uniform(xkey, (2, 3, 16, 16), jnp.float32)

    fwd = jax.jit(functools.partial(model_forward, commitment_cost=commitment_cost))
    loss, recon = fwd(params, x)
    loss = jax.block_until_ready(loss)
    recon = jax.block_until_ready(recon)

    assert recon.shape == (2, 3, 16, 16), recon.shape
    assert loss.shape == (), loss.shape
    print("KERNEL_OK")
</pallas_src>

<mosaic_0001>
module attributes {stable_mosaic.version = 11 : i64} {
  func.func @_mm_kernel(%arg0: i32, %arg1: memref<128x48xbf16, #tpu.memory_space<vmem>>, %arg2: memref<48x128xbf16, #tpu.memory_space<vmem>>, %arg3: memref<1x128xf32, #tpu.memory_space<vmem>>, %arg4: memref<128x128xf32, #tpu.memory_space<vmem>>) attributes {dimension_semantics = [#tpu.dimension_semantics<parallel>], iteration_bounds = array<i64: 1>, scalar_prefetch = 0 : i64, scratch_operands = 0 : i64, tpu.core_type = #tpu.core_type<tc>, window_params = [{transform_indices = @transform_0, window_bounds = array<i64: 128, 48>}, {pipeline_mode = #tpu.pipeline_mode<synchronous>, transform_indices = @transform_1, window_bounds = array<i64: 48, 128>}, {pipeline_mode = #tpu.pipeline_mode<synchronous>, transform_indices = @transform_2, window_bounds = array<i64: 1, 128>}, {transform_indices = @transform_3, window_bounds = array<i64: 128, 128>}]} {
    %c0 = arith.constant 0 : index
    %c0_0 = arith.constant 0 : index
    %0 = vector.load %arg1[%c0, %c0_0] : memref<128x48xbf16, #tpu.memory_space<vmem>>, vector<128x48xbf16>
    %c0_1 = arith.constant 0 : index
    %c0_2 = arith.constant 0 : index
    %1 = vector.load %arg2[%c0_1, %c0_2] : memref<48x128xbf16, #tpu.memory_space<vmem>>, vector<48x128xbf16>
    %cst = arith.constant dense<0.000000e+00> : vector<128x128xf32>
    %2 = tpu.matmul %0, %1, %cst {dimension_numbers = #tpu.dot_dimension_numbers<[1], [0], [0], [1], [0, 0, 1, 1], [], []>} : vector<128x48xbf16>, vector<48x128xbf16>, vector<128x128xf32> -> vector<128x128xf32>
    %c0_3 = arith.constant 0 : index
    %c0_4 = arith.constant 0 : index
    %3 = vector.load %arg3[%c0_3, %c0_4] : memref<1x128xf32, #tpu.memory_space<vmem>>, vector<1x128xf32>
    %4 = vector.broadcast %3 : vector<1x128xf32> to vector<128x128xf32>
    %5 = arith.addf %2, %4 : vector<128x128xf32>
    %cst_5 = arith.constant 0.000000e+00 : f32
    %6 = vector.broadcast %cst_5 : f32 to vector<128x128xf32>
    %7 = arith.maximumf %5, %6 : vector<128x128xf32>
    %c0_6 = arith.constant 0 : index
    %c0_7 = arith.constant 0 : index
    %8 = vector.load %arg4[%c0_6, %c0_7] : memref<128x128xf32, #tpu.memory_space<vmem>>, vector<128x128xf32>
    tpu.vector_store %arg4[%c0_6, %c0_7], %7 {strides = array<i32>} : memref<128x128xf32, #tpu.memory_space<vmem>>, vector<128x128xf32>,
    return
  }
  func.func @transform_0(%arg0: i32) -> (i32, i32) {
    %c0_i32 = arith.constant 0 : i32
    %c0_i32_0 = arith.constant 0 : i32
    return %arg0, %c0_i32 : i32, i32
  }
  func.func @transform_1(%arg0: i32) -> (i32, i32) {
    %c0_i32 = arith.constant 0 : i32
    %c0_i32_0 = arith.constant 0 : i32
    %c0_i32_1 = arith.constant 0 : i32
    return %c0_i32, %c0_i32_0 : i32, i32
  }
  func.func @transform_2(%arg0: i32) -> (i32, i32) {
    %c0_i32 = arith.constant 0 : i32
    %c0_i32_0 = arith.constant 0 : i32
    %c0_i32_1 = arith.constant 0 : i32
    return %c0_i32, %c0_i32_0 : i32, i32
  }
  func.func @transform_3(%arg0: i32) -> (i32, i32) {
    %c0_i32 = arith.constant 0 : i32
    %c0_i32_0 = arith.constant 0 : i32
    return %arg0, %c0_i32 : i32, i32
  }
}

module attributes {stable_mosaic.version = 11 : i64} {
  func.func @_mm_kernel(%arg0: i32, %arg1: memref<32x256xbf16, #tpu.memory_space<vmem>>, %arg2: memref<256x128xbf16, #tpu.memory_space<vmem>>, %arg3: memref<1x128xf32, #tpu.memory_space<vmem>>, %arg4: memref<32x128xf32, #tpu.memory_space<vmem>>) attributes {dimension_semantics = [#tpu.dimension_semantics<parallel>], iteration_bounds = array<i64: 1>, scalar_prefetch = 0 : i64, scratch_operands = 0 : i64, tpu.core_type = #tpu.core_type<tc>, window_params = [{transform_indices = @transform_0, window_bounds = array<i64: 32, 256>}, {pipeline_mode = #tpu.pipeline_mode<synchronous>, transform_indices = @transform_1, window_bounds = array<i64: 256, 128>}, {pipeline_mode = #tpu.pipeline_mode<synchronous>, transform_indices = @transform_2, window_bounds = array<i64: 1, 128>}, {transform_indices = @transform_3, window_bounds = array<i64: 32, 128>}]} {
    %c0 = arith.constant 0 : index
    %c0_0 = arith.constant 0 : index
    %0 = vector.load %arg1[%c0, %c0_0] : memref<32x256xbf16, #tpu.memory_space<vmem>>, vector<32x256xbf16>
    %c0_1 = arith.constant 0 : index
    %c0_2 = arith.constant 0 : index
    %1 = vector.load %arg2[%c0_1, %c0_2] : memref<256x128xbf16, #tpu.memory_space<vmem>>, vector<256x128xbf16>
    %cst = arith.constant dense<0.000000e+00> : vector<32x128xf32>
    %2 = tpu.matmul %0, %1, %cst {dimension_numbers = #tpu.dot_dimension_numbers<[1], [0], [0], [1], [0, 0, 1, 1], [], []>} : vector<32x256xbf16>, vector<256x128xbf16>, vector<32x128xf32> -> vector<32x128xf32>
    %c0_3 = arith.constant 0 : index
    %c0_4 = arith.constant 0 : index
    %3 = vector.load %arg3[%c0_3, %c0_4] : memref<1x128xf32, #tpu.memory_space<vmem>>, vector<1x128xf32>
    %4 = vector.broadcast %3 : vector<1x128xf32> to vector<32x128xf32>
    %5 = arith.addf %2, %4 : vector<32x128xf32>
    %cst_5 = arith.constant 0.000000e+00 : f32
    %6 = vector.broadcast %cst_5 : f32 to vector<32x128xf32>
    %7 = arith.maximumf %5, %6 : vector<32x128xf32>
    %c0_6 = arith.constant 0 : index
    %c0_7 = arith.constant 0 : index
    %8 = vector.load %arg4[%c0_6, %c0_7] : memref<32x128xf32, #tpu.memory_space<vmem>>, vector<32x128xf32>
    tpu.vector_store %arg4[%c0_6, %c0_7], %7 {strides = array<i32>} : memref<32x128xf32, #tpu.memory_space<vmem>>, vector<32x128xf32>,
    return
  }
  func.func @transform_0(%arg0: i32) -> (i32, i32) {
    %c0_i32 = arith.constant 0 : i32
    %c0_i32_0 = arith.constant 0 : i32
    return %arg0, %c0_i32 : i32, i32
  }
  func.func @transform_1(%arg0: i32) -> (i32, i32) {
    %c0_i32 = arith.constant 0 : i32
    %c0_i32_0 = arith.constant 0 : i32
    %c0_i32_1 = arith.constant 0 : i32
    return %c0_i32, %c0_i32_0 : i32, i32
  }
  func.func @transform_2(%arg0: i32) -> (i32, i32) {
    %c0_i32 = arith.constant 0 : i32
    %c0_i32_0 = arith.constant 0 : i32
    %c0_i32_1 = arith.constant 0 : i32
    return %c0_i32, %c0_i32_0 : i32, i32
  }
  func.func @transform_3(%arg0: i32) -> (i32, i32) {
    %c0_i32 = arith.constant 0 : i32
    %c0_i32_0 = arith.constant 0 : i32
    return %arg0, %c0_i32 : i32, i32
  }
}

module attributes {stable_mosaic.version = 11 : i64} {
  func.func @_mm_kernel(%arg0: i32, %arg1: memref<32x288xbf16, #tpu.memory_space<vmem>>, %arg2: memref<288x128xbf16, #tpu.memory_space<vmem>>, %arg3: memref<1x128xf32, #tpu.memory_space<vmem>>, %arg4: memref<32x128xf32, #tpu.memory_space<vmem>>) attributes {dimension_semantics = [#tpu.dimension_semantics<parallel>], iteration_bounds = array<i64: 1>, scalar_prefetch = 0 : i64, scratch_operands = 0 : i64, tpu.core_type = #tpu.core_type<tc>, window_params = [{transform_indices = @transform_0, window_bounds = array<i64: 32, 288>}, {pipeline_mode = #tpu.pipeline_mode<synchronous>, transform_indices = @transform_1, window_bounds = array<i64: 288, 128>}, {pipeline_mode = #tpu.pipeline_mode<synchronous>, transform_indices = @transform_2, window_bounds = array<i64: 1, 128>}, {transform_indices = @transform_3, window_bounds = array<i64: 32, 128>}]} {
    %c0 = arith.constant 0 : index
    %c0_0 = arith.constant 0 : index
    %0 = vector.load %arg1[%c0, %c0_0] : memref<32x288xbf16, #tpu.memory_space<vmem>>, vector<32x288xbf16>
    %c0_1 = arith.constant 0 : index
    %c0_2 = arith.constant 0 : index
    %1 = vector.load %arg2[%c0_1, %c0_2] : memref<288x128xbf16, #tpu.memory_space<vmem>>, vector<288x128xbf16>
    %cst = arith.constant dense<0.000000e+00> : vector<32x128xf32>
    %2 = tpu.matmul %0, %1, %cst {dimension_numbers = #tpu.dot_dimension_numbers<[1], [0], [0], [1], [0, 0, 1, 1], [], []>} : vector<32x288xbf16>, vector<288x128xbf16>, vector<32x128xf32> -> vector<32x128xf32>
    %c0_3 = arith.constant 0 : index
    %c0_4 = arith.constant 0 : index
    %3 = vector.load %arg3[%c0_3, %c0_4] : memref<1x128xf32, #tpu.memory_space<vmem>>, vector<1x128xf32>
    %4 = vector.broadcast %3 : vector<1x128xf32> to vector<32x128xf32>
    %5 = arith.addf %2, %4 : vector<32x128xf32>
    %c0_5 = arith.constant 0 : index
    %c0_6 = arith.constant 0 : index
    %6 = vector.load %arg4[%c0_5, %c0_6] : memref<32x128xf32, #tpu.memory_space<vmem>>, vector<32x128xf32>
    tpu.vector_store %arg4[%c0_5, %c0_6], %5 {strides = array<i32>} : memref<32x128xf32, #tpu.memory_space<vmem>>, vector<32x128xf32>,
    return
  }
  func.func @transform_0(%arg0: i32) -> (i32, i32) {
    %c0_i32 = arith.constant 0 : i32
    %c0_i32_0 = arith.constant 0 : i32
    return %arg0, %c0_i32 : i32, i32
  }
  func.func @transform_1(%arg0: i32) -> (i32, i32) {
    %c0_i32 = arith.constant 0 : i32
    %c0_i32_0 = arith.constant 0 : i32
    %c0_i32_1 = arith.constant 0 : i32
    return %c0_i32, %c0_i32_0 : i32, i32
  }
  func.func @transform_2(%arg0: i32) -> (i32, i32) {
    %c0_i32 = arith.constant 0 : i32
    %c0_i32_0 = arith.constant 0 : i32
    %c0_i32_1 = arith.constant 0 : i32
    return %c0_i32, %c0_i32_0 : i32, i32
  }
  func.func @transform_3(%arg0: i32) -> (i32, i32) {
    %c0_i32 = arith.constant 0 : i32
    %c0_i32_0 = arith.constant 0 : i32
    return %arg0, %c0_i32 : i32, i32
  }
}

module attributes {stable_mosaic.version = 11 : i64} {
  func.func @_mm_kernel(%arg0: i32, %arg1: memref<32x32xbf16, #tpu.memory_space<vmem>>, %arg2: memref<32x128xbf16, #tpu.memory_space<vmem>>, %arg3: memref<1x128xf32, #tpu.memory_space<vmem>>, %arg4: memref<32x128xf32, #tpu.memory_space<vmem>>) attributes {dimension_semantics = [#tpu.dimension_semantics<parallel>], iteration_bounds = array<i64: 1>, scalar_prefetch = 0 : i64, scratch_operands = 0 : i64, tpu.core_type = #tpu.core_type<tc>, window_params = [{transform_indices = @transform_0, window_bounds = array<i64: 32, 32>}, {pipeline_mode = #tpu.pipeline_mode<synchronous>, transform_indices = @transform_1, window_bounds = array<i64: 32, 128>}, {pipeline_mode = #tpu.pipeline_mode<synchronous>, transform_indices = @transform_2, window_bounds = array<i64: 1, 128>}, {transform_indices = @transform_3, window_bounds = array<i64: 32, 128>}]} {
    %c0 = arith.constant 0 : index
    %c0_0 = arith.constant 0 : index
    %0 = vector.load %arg1[%c0, %c0_0] : memref<32x32xbf16, #tpu.memory_space<vmem>>, vector<32x32xbf16>
    %cst = arith.constant 0.000000e+00 : bf16
    %1 = vector.broadcast %cst : bf16 to vector<32x32xbf16>
    %2 = arith.maximumf %0, %1 : vector<32x32xbf16>
    %c0_1 = arith.constant 0 : index
    %c0_2 = arith.constant 0 : index
    %3 = vector.load %arg2[%c0_1, %c0_2] : memref<32x128xbf16, #tpu.memory_space<vmem>>, vector<32x128xbf16>
    %cst_3 = arith.constant dense<0.000000e+00> : vector<32x128xf32>
    %4 = tpu.matmul %2, %3, %cst_3 {dimension_numbers = #tpu.dot_dimension_numbers<[1], [0], [0], [1], [0, 0, 1, 1], [], []>} : vector<32x32xbf16>, vector<32x128xbf16>, vector<32x128xf32> -> vector<32x128xf32>
    %c0_4 = arith.constant 0 : index
    %c0_5 = arith.constant 0 : index
    %5 = vector.load %arg3[%c0_4, %c0_5] : memref<1x128xf32, #tpu.memory_space<vmem>>, vector<1x128xf32>
    %6 = vector.broadcast %5 : vector<1x128xf32> to vector<32x128xf32>
    %7 = arith.addf %4, %6 : vector<32x128xf32>
    %c0_6 = arith.constant 0 : index
    %c0_7 = arith.constant 0 : index
    %8 = vector.load %arg4[%c0_6, %c0_7] : memref<32x128xf32, #tpu.memory_space<vmem>>, vector<32x128xf32>
    tpu.vector_store %arg4[%c0_6, %c0_7], %7 {strides = array<i32>} : memref<32x128xf32, #tpu.memory_space<vmem>>, vector<32x128xf32>,
    return
  }
  func.func @transform_0(%arg0: i32) -> (i32, i32) {
    %c0_i32 = arith.constant 0 : i32
    %c0_i32_0 = arith.constant 0 : i32
    return %arg0, %c0_i32 : i32, i32
  }
  func.func @transform_1(%arg0: i32) -> (i32, i32) {
    %c0_i32 = arith.constant 0 : i32
    %c0_i32_0 = arith.constant 0 : i32
    %c0_i32_1 = arith.constant 0 : i32
    return %c0_i32, %c0_i32_0 : i32, i32
  }
  func.func @transform_2(%arg0: i32) -> (i32, i32) {
    %c0_i32 = arith.constant 0 : i32
    %c0_i32_0 = arith.constant 0 : i32
    %c0_i32_1 = arith.constant 0 : i32
    return %c0_i32, %c0_i32_0 : i32, i32
  }
  func.func @transform_3(%arg0: i32) -> (i32, i32) {
    %c0_i32 = arith.constant 0 : i32
    %c0_i32_0 = arith.constant 0 : i32
    return %arg0, %c0_i32 : i32, i32
  }
}

module attributes {stable_mosaic.version = 11 : i64} {
  func.func @_res_kernel(%arg0: i32, %arg1: memref<32x288xbf16, #tpu.memory_space<vmem>>, %arg2: memref<288x128xbf16, #tpu.memory_space<vmem>>, %arg3: memref<128x128xbf16, #tpu.memory_space<vmem>>, %arg4: memref<32x128xf32, #tpu.memory_space<vmem>>, %arg5: memref<32x128xf32, #tpu.memory_space<vmem>>) attributes {dimension_semantics = [#tpu.dimension_semantics<parallel>], iteration_bounds = array<i64: 1>, scalar_prefetch = 0 : i64, scratch_operands = 0 : i64, tpu.core_type = #tpu.core_type<tc>, window_params = [{transform_indices = @transform_0, window_bounds = array<i64: 32, 288>}, {pipeline_mode = #tpu.pipeline_mode<synchronous>, transform_indices = @transform_1, window_bounds = array<i64: 288, 128>}, {pipeline_mode = #tpu.pipeline_mode<synchronous>, transform_indices = @transform_2, window_bounds = array<i64: 128, 128>}, {transform_indices = @transform_3, window_bounds = array<i64: 32, 128>}, {transform_indices = @transform_4, window_bounds = array<i64: 32, 128>}]} {
    %c0 = arith.constant 0 : index
    %c0_0 = arith.constant 0 : index
    %0 = vector.load %arg1[%c0, %c0_0] : memref<32x288xbf16, #tpu.memory_space<vmem>>, vector<32x288xbf16>
    %cst = arith.constant 0.000000e+00 : bf16
    %1 = vector.broadcast %cst : bf16 to vector<32x288xbf16>
    %2 = arith.maximumf %0, %1 : vector<32x288xbf16>
    %c0_1 = arith.constant 0 : index
    %c0_2 = arith.constant 0 : index
    %3 = vector.load %arg2[%c0_1, %c0_2] : memref<288x128xbf16, #tpu.memory_space<vmem>>, vector<288x128xbf16>
    %cst_3 = arith.constant dense<0.000000e+00> : vector<32x128xf32>
    %4 = tpu.matmul %2, %3, %cst_3 {dimension_numbers = #tpu.dot_dimension_numbers<[1], [0], [0], [1], [0, 0, 1, 1], [], []>} : vector<32x288xbf16>, vector<288x128xbf16>, vector<32x128xf32> -> vector<32x128xf32>
    %cst_4 = arith.constant 0.000000e+00 : f32
    %5 = vector.broadcast %cst_4 : f32 to vector<32x128xf32>
    %6 = arith.maximumf %4, %5 : vector<32x128xf32>
    %7 = arith.truncf %6 : vector<32x128xf32> to vector<32x128xbf16>
    %c0_5 = arith.constant 0 : index
    %c0_6 = arith.constant 0 : index
    %8 = vector.load %arg3[%c0_5, %c0_6] : memref<128x128xbf16, #tpu.memory_space<vmem>>, vector<128x128xbf16>
    %cst_7 = arith.constant dense<0.000000e+00> : vector<32x128xf32>
    %9 = tpu.matmul %7, %8, %cst_7 {dimension_numbers = #tpu.dot_dimension_numbers<[1], [0], [0], [1], [0, 0, 1, 1], [], []>} : vector<32x128xbf16>, vector<128x128xbf16>, vector<32x128xf32> -> vector<32x128xf32>
    %c0_8 = arith.constant 0 : index
    %c0_9 = arith.constant 0 : index
    %10 = vector.load %arg4[%c0_8, %c0_9] : memref<32x128xf32, #tpu.memory_space<vmem>>, vector<32x128xf32>
    %11 = arith.addf %10, %9 : vector<32x128xf32>
    %c0_10 = arith.constant 0 : index
    %c0_11 = arith.constant 0 : index
    %12 = vector.load %arg5[%c0_10, %c0_11] : memref<32x128xf32, #tpu.memory_space<vmem>>, vector<32x128xf32>
    tpu.vector_store %arg5[%c0_10, %c0_11], %11 {strides = array<i32>} : memref<32x128xf32, #tpu.memory_space<vmem>>, vector<32x128xf32>,
    return
  }
  func.func @transform_0(%arg0: i32) -> (i32, i32) {
    %c0_i32 = arith.constant 0 : i32
    %c0_i32_0 = arith.constant 0 : i32
    return %arg0, %c0_i32 : i32, i32
  }
  func.func @transform_1(%arg0: i32) -> (i32, i32) {
    %c0_i32 = arith.constant 0 : i32
    %c0_i32_0 = arith.constant 0 : i32
    %c0_i32_1 = arith.constant 0 : i32
    return %c0_i32, %c0_i32_0 : i32, i32
  }
  func.func @transform_2(%arg0: i32) -> (i32, i32) {
    %c0_i32 = arith.constant 0 : i32
    %c0_i32_0 = arith.constant 0 : i32
    %c0_i32_1 = arith.constant 0 : i32
    return %c0_i32, %c0_i32_0 : i32, i32
  }
  func.func @transform_3(%arg0: i32) -> (i32, i32) {
    %c0_i32 = arith.constant 0 : i32
    %c0_i32_0 = arith.constant 0 : i32
    return %arg0, %c0_i32 : i32, i32
  }
  func.func @transform_4(%arg0: i32) -> (i32, i32) {
    %c0_i32 = arith.constant 0 : i32
    %c0_i32_0 = arith.constant 0 : i32
    return %arg0, %c0_i32 : i32, i32
  }
}

module attributes {stable_mosaic.version = 11 : i64} {
  func.func @_vq_kernel(%arg0: i32, %arg1: memref<32x128xf32, #tpu.memory_space<vmem>>, %arg2: memref<128x128xf32, #tpu.memory_space<vmem>>, %arg3: memref<32x128xf32, #tpu.memory_space<vmem>>, %arg4: memref<1x1xf32, #tpu.memory_space<vmem>>) attributes {dimension_semantics = [#tpu.dimension_semantics<arbitrary>], iteration_bounds = array<i64: 1>, scalar_prefetch = 0 : i64, scratch_operands = 0 : i64, tpu.core_type = #tpu.core_type<tc>, window_params = [{pipeline_mode = #tpu.pipeline_mode<synchronous>, transform_indices = @transform_0, window_bounds = array<i64: 32, 128>}, {pipeline_mode = #tpu.pipeline_mode<synchronous>, transform_indices = @transform_1, window_bounds = array<i64: 128, 128>}, {pipeline_mode = #tpu.pipeline_mode<synchronous>, transform_indices = @transform_2, window_bounds = array<i64: 32, 128>}, {pipeline_mode = #tpu.pipeline_mode<synchronous>, transform_indices = @transform_3, window_bounds = array<i64: 1, 1>}]} {
    %c0 = arith.constant 0 : index
    %c0_0 = arith.constant 0 : index
    %0 = vector.load %arg1[%c0, %c0_0] : memref<32x128xf32, #tpu.memory_space<vmem>>, vector<32x128xf32>
    %c0_1 = arith.constant 0 : index
    %c0_2 = arith.constant 0 : index
    %1 = vector.load %arg2[%c0_1, %c0_2] : memref<128x128xf32, #tpu.memory_space<vmem>>, vector<128x128xf32>
    %2 = arith.mulf %0, %0 : vector<32x128xf32>
    %cst = arith.constant dense<0.000000e+00> : vector<32xf32>
    %3 = vector.multi_reduction <add>, %2, %cst [1] : vector<32x128xf32> to vector<32xf32>
    %4 = vector.shape_cast %3 : vector<32xf32> to vector<32x1xf32>
    %5 = arith.mulf %1, %1 : vector<128x128xf32>
    %cst_3 = arith.constant dense<0.000000e+00> : vector<128xf32>
    %6 = vector.multi_reduction <add>, %5, %cst_3 [1] : vector<128x128xf32> to vector<128xf32>
    %7 = vector.shape_cast %6 : vector<128xf32> to vector<1x128xf32>
    %8 = tpu.transpose %1, [1, 0] : vector<128x128xf32> -> vector<128x128xf32>
    %cst_4 = arith.constant dense<0.000000e+00> : vector<32x128xf32>
    %9 = tpu.matmul %0, %8, %cst_4 {dimension_numbers = #tpu.dot_dimension_numbers<[1], [0], [0], [1], [0, 0, 1, 1], [], []>} : vector<32x128xf32>, vector<128x128xf32>, vector<32x128xf32> -> vector<32x128xf32>
    %10 = vector.broadcast %4 : vector<32x1xf32> to vector<32x128xf32>
    %11 = vector.broadcast %7 : vector<1x128xf32> to vector<32x128xf32>
    %12 = arith.addf %10, %11 : vector<32x128xf32>
    %cst_5 = arith.constant 2.000000e+00 : f32
    %13 = vector.broadcast %cst_5 : f32 to vector<32x128xf32>
    %14 = arith.mulf %13, %9 : vector<32x128xf32>
    %15 = arith.subf %12, %14 : vector<32x128xf32>
    %16 = tpu.iota {dimensions = array<i32: 1>} : vector<32x128xi32>
    %c32_i32 = arith.constant 32 : i32
    %17 = vector.broadcast %c32_i32 : i32 to vector<32x128xi32>
    %18 = arith.cmpi slt, %16, %17 : vector<32x128xi32>
    %cst_6 = arith.constant 1.000000e+30 : f32
    %19 = vector.broadcast %cst_6 : f32 to vector<32x128xf32>
    %20 = arith.select %18, %15, %19 : vector<32x128xi1>, vector<32x128xf32>
    %cst_7 = arith.constant dense<0x7F800000> : vector<32xf32>
    %21 = vector.multi_reduction <minimumf>, %20, %cst_7 [1] : vector<32x128xf32> to vector<32xf32>
    %22 = vector.shape_cast %21 : vector<32xf32> to vector<32x1xf32>
    %23 = vector.broadcast %22 : vector<32x1xf32> to vector<32x128xf32>
    %24 = arith.cmpf oeq, %20, %23 : vector<32x128xf32>
    %c128_i32 = arith.constant 128 : i32
    %25 = vector.broadcast %c128_i32 : i32 to vector<32x128xi32>
    %26 = arith.select %24, %16, %25 : vector<32x128xi1>, vector<32x128xi32>
    %cst_8 = arith.constant dense<2147483647> : vector<32xi32>
    %27 = vector.multi_reduction <minsi>, %26, %cst_8 [1] : vector<32x128xi32> to vector<32xi32>
    %28 = vector.shape_cast %27 : vector<32xi32> to vector<32x1xi32>
    %29 = vector.broadcast %28 : vector<32x1xi32> to vector<32x128xi32>
    %30 = arith.cmpi eq, %16, %29 : vector<32x128xi32>
    %31 = arith.extui %30 : vector<32x128xi1> to vector<32x128xi32>
    %32 = arith.sitofp %31 : vector<32x128xi32> to vector<32x128xf32>
    %cst_9 = arith.constant dense<0.000000e+00> : vector<32x128xf32>
    %33 = tpu.matmul %32, %1, %cst_9 {dimension_numbers = #tpu.dot_dimension_numbers<[1], [0], [0], [1], [0, 0, 1, 1], [], []>} : vector<32x128xf32>, vector<128x128xf32>, vector<32x128xf32> -> vector<32x128xf32>
    %c0_10 = arith.constant 0 : index
    %c0_11 = arith.constant 0 : index
    %34 = vector.load %arg3[%c0_10, %c0_11] : memref<32x128xf32, #tpu.memory_space<vmem>>, vector<32x128xf32>
    tpu.vector_store %arg3[%c0_10, %c0_11], %33 {strides = array<i32>} : memref<32x128xf32, #tpu.memory_space<vmem>>, vector<32x128xf32>,
    %35 = tpu.iota {dimensions = array<i32: 0>} : vector<32x128xi32>
    %c32_i32_12 = arith.constant 32 : i32
    %36 = vector.broadcast %c32_i32_12 : i32 to vector<32x128xi32>
    %37 = arith.cmpi slt, %35, %36 : vector<32x128xi32>
    %38 = arith.subf %33, %0 : vector<32x128xf32>
    %cst_13 = arith.constant 0.000000e+00 : f32
    %39 = vector.broadcast %cst_13 : f32 to vector<32x128xf32>
    %40 = arith.select %37, %38, %39 : vector<32x128xi1>, vector<32x128xf32>
    %41 = arith.mulf %40, %40 : vector<32x128xf32>
    %42 = vector.shape_cast %41 : vector<32x128xf32> to vector<1x32x128xf32>
    %cst_14 = arith.constant dense<0.000000e+00> : vector<1xf32>
    %43 = vector.multi_reduction <add>, %42, %cst_14 [1, 2] : vector<1x32x128xf32> to vector<1xf32>
    %44 = vector.shape_cast %43 : vector<1xf32> to vector<1x1x1xf32>
    %45 = vector.extract %44[0, 0, 0] : f32 from vector<1x1x1xf32>
    %cst_15 = arith.constant 5.120000e+02 : f32
    %46 = arith.divf %45, %cst_15 : f32
    %cst_16 = arith.constant 1.250000e+00 : f32
    %47 = arith.mulf %cst_16, %46 : f32
    %48 = vector.broadcast %47 : f32 to vector<1x1xf32>
    %c0_17 = arith.constant 0 : index
    %c0_18 = arith.constant 0 : index
    %49 = vector.load %arg4[%c0_17, %c0_18] : memref<1x1xf32, #tpu.memory_space<vmem>>, vector<1x1xf32>
    tpu.vector_store %arg4[%c0_17, %c0_18], %48 {strides = array<i32>} : memref<1x1xf32, #tpu.memory_space<vmem>>, vector<1x1xf32>,
    return
  }
  func.func @transform_0(%arg0: i32) -> (i32, i32) {
    %c0_i32 = arith.constant 0 : i32
    %c0_i32_0 = arith.constant 0 : i32
    %c0_i32_1 = arith.constant 0 : i32
    return %c0_i32, %c0_i32_0 : i32, i32
  }
  func.func @transform_1(%arg0: i32) -> (i32, i32) {
    %c0_i32 = arith.constant 0 : i32
    %c0_i32_0 = arith.constant 0 : i32
    %c0_i32_1 = arith.constant 0 : i32
    return %c0_i32, %c0_i32_0 : i32, i32
  }
  func.func @transform_2(%arg0: i32) -> (i32, i32) {
    %c0_i32 = arith.constant 0 : i32
    %c0_i32_0 = arith.constant 0 : i32
    %c0_i32_1 = arith.constant 0 : i32
    return %c0_i32, %c0_i32_0 : i32, i32
  }
  func.func @transform_3(%arg0: i32) -> (i32, i32) {
    %c0_i32 = arith.constant 0 : i32
    %c0_i32_0 = arith.constant 0 : i32
    %c0_i32_1 = arith.constant 0 : i32
    return %c0_i32, %c0_i32_0 : i32, i32
  }
}

module attributes {stable_mosaic.version = 11 : i64} {
  func.func @_mm_kernel(%arg0: i32, %arg1: memref<32x144xbf16, #tpu.memory_space<vmem>>, %arg2: memref<144x128xbf16, #tpu.memory_space<vmem>>, %arg3: memref<1x128xf32, #tpu.memory_space<vmem>>, %arg4: memref<32x128xf32, #tpu.memory_space<vmem>>) attributes {dimension_semantics = [#tpu.dimension_semantics<parallel>], iteration_bounds = array<i64: 1>, scalar_prefetch = 0 : i64, scratch_operands = 0 : i64, tpu.core_type = #tpu.core_type<tc>, window_params = [{transform_indices = @transform_0, window_bounds = array<i64: 32, 144>}, {pipeline_mode = #tpu.pipeline_mode<synchronous>, transform_indices = @transform_1, window_bounds = array<i64: 144, 128>}, {pipeline_mode = #tpu.pipeline_mode<synchronous>, transform_indices = @transform_2, window_bounds = array<i64: 1, 128>}, {transform_indices = @transform_3, window_bounds = array<i64: 32, 128>}]} {
    %c0 = arith.constant 0 : index
    %c0_0 = arith.constant 0 : index
    %0 = vector.load %arg1[%c0, %c0_0] : memref<32x144xbf16, #tpu.memory_space<vmem>>, vector<32x144xbf16>
    %c0_1 = arith.constant 0 : index
    %c0_2 = arith.constant 0 : index
    %1 = vector.load %arg2[%c0_1, %c0_2] : memref<144x128xbf16, #tpu.memory_space<vmem>>, vector<144x128xbf16>
    %cst = arith.constant dense<0.000000e+00> : vector<32x128xf32>
    %2 = tpu.matmul %0, %1, %cst {dimension_numbers = #tpu.dot_dimension_numbers<[1], [0], [0], [1], [0, 0, 1, 1], [], []>} : vector<32x144xbf16>, vector<144x128xbf16>, vector<32x128xf32> -> vector<32x128xf32>
    %c0_3 = arith.constant 0 : index
    %c0_4 = arith.constant 0 : index
    %3 = vector.load %arg3[%c0_3, %c0_4] : memref<1x128xf32, #tpu.memory_space<vmem>>, vector<1x128xf32>
    %4 = vector.broadcast %3 : vector<1x128xf32> to vector<32x128xf32>
    %5 = arith.addf %2, %4 : vector<32x128xf32>
    %c0_5 = arith.constant 0 : index
    %c0_6 = arith.constant 0 : index
    %6 = vector.load %arg4[%c0_5, %c0_6] : memref<32x128xf32, #tpu.memory_space<vmem>>, vector<32x128xf32>
    tpu.vector_store %arg4[%c0_5, %c0_6], %5 {strides = array<i32>} : memref<32x128xf32, #tpu.memory_space<vmem>>, vector<32x128xf32>,
    return
  }
  func.func @transform_0(%arg0: i32) -> (i32, i32) {
    %c0_i32 = arith.constant 0 : i32
    %c0_i32_0 = arith.constant 0 : i32
    return %arg0, %c0_i32 : i32, i32
  }
  func.func @transform_1(%arg0: i32) -> (i32, i32) {
    %c0_i32 = arith.constant 0 : i32
    %c0_i32_0 = arith.constant 0 : i32
    %c0_i32_1 = arith.constant 0 : i32
    return %c0_i32, %c0_i32_0 : i32, i32
  }
  func.func @transform_2(%arg0: i32) -> (i32, i32) {
    %c0_i32 = arith.constant 0 : i32
    %c0_i32_0 = arith.constant 0 : i32
    %c0_i32_1 = arith.constant 0 : i32
    return %c0_i32, %c0_i32_0 : i32, i32
  }
  func.func @transform_3(%arg0: i32) -> (i32, i32) {
    %c0_i32 = arith.constant 0 : i32
    %c0_i32_0 = arith.constant 0 : i32
    return %arg0, %c0_i32 : i32, i32
  }
}

module attributes {stable_mosaic.version = 11 : i64} {
  func.func @_mm_kernel(%arg0: i32, %arg1: memref<56x128xbf16, #tpu.memory_space<vmem>>, %arg2: memref<128x128xbf16, #tpu.memory_space<vmem>>, %arg3: memref<1x128xf32, #tpu.memory_space<vmem>>, %arg4: memref<56x128xf32, #tpu.memory_space<vmem>>) attributes {dimension_semantics = [#tpu.dimension_semantics<parallel>], iteration_bounds = array<i64: 1>, scalar_prefetch = 0 : i64, scratch_operands = 0 : i64, tpu.core_type = #tpu.core_type<tc>, window_params = [{transform_indices = @transform_0, window_bounds = array<i64: 56, 128>}, {pipeline_mode = #tpu.pipeline_mode<synchronous>, transform_indices = @transform_1, window_bounds = array<i64: 128, 128>}, {pipeline_mode = #tpu.pipeline_mode<synchronous>, transform_indices = @transform_2, window_bounds = array<i64: 1, 128>}, {transform_indices = @transform_3, window_bounds = array<i64: 56, 128>}]} {
    %c0 = arith.constant 0 : index
    %c0_0 = arith.constant 0 : index
    %0 = vector.load %arg1[%c0, %c0_0] : memref<56x128xbf16, #tpu.memory_space<vmem>>, vector<56x128xbf16>
    %c0_1 = arith.constant 0 : index
    %c0_2 = arith.constant 0 : index
    %1 = vector.load %arg2[%c0_1, %c0_2] : memref<128x128xbf16, #tpu.memory_space<vmem>>, vector<128x128xbf16>
    %cst = arith.constant dense<0.000000e+00> : vector<56x128xf32>
    %2 = tpu.matmul %0, %1, %cst {dimension_numbers = #tpu.dot_dimension_numbers<[1], [0], [0], [1], [0, 0, 1, 1], [], []>} : vector<56x128xbf16>, vector<128x128xbf16>, vector<56x128xf32> -> vector<56x128xf32>
    %c0_3 = arith.constant 0 : index
    %c0_4 = arith.constant 0 : index
    %3 = vector.load %arg3[%c0_3, %c0_4] : memref<1x128xf32, #tpu.memory_space<vmem>>, vector<1x128xf32>
    %4 = vector.broadcast %3 : vector<1x128xf32> to vector<56x128xf32>
    %5 = arith.addf %2, %4 : vector<56x128xf32>
    %cst_5 = arith.constant 0.000000e+00 : f32
    %6 = vector.broadcast %cst_5 : f32 to vector<56x128xf32>
    %7 = arith.maximumf %5, %6 : vector<56x128xf32>
    %c0_6 = arith.constant 0 : index
    %c0_7 = arith.constant 0 : index
    %8 = vector.load %arg4[%c0_6, %c0_7] : memref<56x128xf32, #tpu.memory_space<vmem>>, vector<56x128xf32>
    tpu.vector_store %arg4[%c0_6, %c0_7], %7 {strides = array<i32>} : memref<56x128xf32, #tpu.memory_space<vmem>>, vector<56x128xf32>,
    return
  }
  func.func @transform_0(%arg0: i32) -> (i32, i32) {
    %c0_i32 = arith.constant 0 : i32
    %c0_i32_0 = arith.constant 0 : i32
    return %arg0, %c0_i32 : i32, i32
  }
  func.func @transform_1(%arg0: i32) -> (i32, i32) {
    %c0_i32 = arith.constant 0 : i32
    %c0_i32_0 = arith.constant 0 : i32
    %c0_i32_1 = arith.constant 0 : i32
    return %c0_i32, %c0_i32_0 : i32, i32
  }
  func.func @transform_2(%arg0: i32) -> (i32, i32) {
    %c0_i32 = arith.constant 0 : i32
    %c0_i32_0 = arith.constant 0 : i32
    %c0_i32_1 = arith.constant 0 : i32
    return %c0_i32, %c0_i32_0 : i32, i32
  }
  func.func @transform_3(%arg0: i32) -> (i32, i32) {
    %c0_i32 = arith.constant 0 : i32
    %c0_i32_0 = arith.constant 0 : i32
    return %arg0, %c0_i32 : i32, i32
  }
}

module attributes {stable_mosaic.version = 11 : i64} {
  func.func @_mm_kernel(%arg0: i32, %arg1: memref<168x64xbf16, #tpu.memory_space<vmem>>, %arg2: memref<64x128xbf16, #tpu.memory_space<vmem>>, %arg3: memref<1x128xf32, #tpu.memory_space<vmem>>, %arg4: memref<168x128xf32, #tpu.memory_space<vmem>>) attributes {dimension_semantics = [#tpu.dimension_semantics<parallel>], iteration_bounds = array<i64: 1>, scalar_prefetch = 0 : i64, scratch_operands = 0 : i64, tpu.core_type = #tpu.core_type<tc>, window_params = [{transform_indices = @transform_0, window_bounds = array<i64: 168, 64>}, {pipeline_mode = #tpu.pipeline_mode<synchronous>, transform_indices = @transform_1, window_bounds = array<i64: 64, 128>}, {pipeline_mode = #tpu.pipeline_mode<synchronous>, transform_indices = @transform_2, window_bounds = array<i64: 1, 128>}, {transform_indices = @transform_3, window_bounds = array<i64: 168, 128>}]} {
    %c0 = arith.constant 0 : index
    %c0_0 = arith.constant 0 : index
    %0 = vector.load %arg1[%c0, %c0_0] : memref<168x64xbf16, #tpu.memory_space<vmem>>, vector<168x64xbf16>
    %c0_1 = arith.constant 0 : index
    %c0_2 = arith.constant 0 : index
    %1 = vector.load %arg2[%c0_1, %c0_2] : memref<64x128xbf16, #tpu.memory_space<vmem>>, vector<64x128xbf16>
    %cst = arith.constant dense<0.000000e+00> : vector<168x128xf32>
    %2 = tpu.matmul %0, %1, %cst {dimension_numbers = #tpu.dot_dimension_numbers<[1], [0], [0], [1], [0, 0, 1, 1], [], []>} : vector<168x64xbf16>, vector<64x128xbf16>, vector<168x128xf32> -> vector<168x128xf32>
    %c0_3 = arith.constant 0 : index
    %c0_4 = arith.constant 0 : index
    %3 = vector.load %arg3[%c0_3, %c0_4] : memref<1x128xf32, #tpu.memory_space<vmem>>, vector<1x128xf32>
    %4 = vector.broadcast %3 : vector<1x128xf32> to vector<168x128xf32>
    %5 = arith.addf %2, %4 : vector<168x128xf32>
    %c0_5 = arith.constant 0 : index
    %c0_6 = arith.constant 0 : index
    %6 = vector.load %arg4[%c0_5, %c0_6] : memref<168x128xf32, #tpu.memory_space<vmem>>, vector<168x128xf32>
    tpu.vector_store %arg4[%c0_5, %c0_6], %5 {strides = array<i32>} : memref<168x128xf32, #tpu.memory_space<vmem>>, vector<168x128xf32>,
    return
  }
  func.func @transform_0(%arg0: i32) -> (i32, i32) {
    %c0_i32 = arith.constant 0 : i32
    %c0_i32_0 = arith.constant 0 : i32
    return %arg0, %c0_i32 : i32, i32
  }
  func.func @transform_1(%arg0: i32) -> (i32, i32) {
    %c0_i32 = arith.constant 0 : i32
    %c0_i32_0 = arith.constant 0 : i32
    %c0_i32_1 = arith.constant 0 : i32
    return %c0_i32, %c0_i32_0 : i32, i32
  }
  func.func @transform_2(%arg0: i32) -> (i32, i32) {
    %c0_i32 = arith.constant 0 : i32
    %c0_i32_0 = arith.constant 0 : i32
    %c0_i32_1 = arith.constant 0 : i32
    return %c0_i32, %c0_i32_0 : i32, i32
  }
  func.func @transform_3(%arg0: i32) -> (i32, i32) {
    %c0_i32 = arith.constant 0 : i32
    %c0_i32_0 = arith.constant 0 : i32
    return %arg0, %c0_i32 : i32, i32
  }
}

</mosaic_0001>

<bundles_post_ra>
// kernel: model_forward.12
= control target key start
LH: loop header
LB: loop body
LE: loop exit
PB: predicated region body
PF: predicated region fallthrough
CT: control target
= control target key end

     0   :  { %vm102_vm0 = vcmask 392192   ;;  %s442_s1 = inlined_call_operand.vmem [shape: bf16[48,128], index: 1, kind: input, shape index: {}]   ;;  %s443_s0 = inlined_call_operand.vmem [shape: bf16[128,48], index: 0, kind: input, shape index: {}]   ;;  %s444_s2 = inlined_call_operand.vmem [shape: f32[1,128], index: 2, kind: input, shape index: {}]   ;;  %s445_s3 = inlined_call_operand.vmem [shape: f32[128,128], index: 3, kind: output, shape index: {}]  }
   0x1   :  { %v319_v0 = vld [vmem:[%s442_s1] sm:$0xff]   ;;  %v320_v1 = vld [vmem:[%s442_s1 + $0x8] sm:$0xff]   ;;  %v321_v2 = vld [vmem:[%s442_s1 + $0x10] sm:$0xff]  }
   0x2   :  { %291 = vmatprep.subr.bf16.mxu0 %v319_v0  ;;  %313 = vmatprep.subr.bf16.mxu1 %v319_v0  ;;  %v322_v3 = vld [vmem:[%s443_s0] sm:$0xff]   ;;  %v324_v5 = vld [vmem:[%s443_s0 + $0x8] sm:$0xff]   ;;  %v326_v7 = vld [vmem:[%s443_s0 + $0x10] sm:$0xff]  }
   0x3   :  { %292 = vmatpush3.bf16.msra.mxu0 %v319_v0  ;;  %316 = vmatpush3.bf16.msra.mxu1 %v319_v0  ;;  %v323_v4 = vld [vmem:[%s443_s0 + $0x20] sm:$0xff]   ;;  %v325_v6 = vld [vmem:[%s443_s0 + $0x28] sm:$0xff]   ;;  %v327_v8 = vld [vmem:[%s443_s0 + $0x30] sm:$0xff]  }
   0x4   :  { %293 = vmatprep.subr.bf16.mxu0 %v320_v1  ;;  %314 = vmatprep.subr.bf16.mxu1 %v320_v1  ;;  %v328_v9 = vld [vmem:[%s443_s0 + $0x18] sm:$0xff]   ;;  %v260_v11 = vld [vmem:[%s444_s2] ss:$0 sm:$0xff] }
   0x5   :  { %297 = vmatprep.mubr.msk.bf16.mxu0 %vm102_vm0, %v322_v3  ;;  %305 = vmatprep.mubr.msk.bf16.mxu1 %vm102_vm0, %v323_v4  ;;  %v329_v10 = vld [vmem:[%s443_s0 + $0x38] sm:$0xff]  }
   0x7   :  { %294 = vmatpush3.bf16.msra.mxu0 %v320_v1  ;;  %317 = vmatpush3.bf16.msra.mxu1 %v320_v1 }
   0x8   :  { %295 = vmatprep.subr.bf16.mxu0 %v321_v2  ;;  %315 = vmatprep.subr.bf16.mxu1 %v321_v2 }
   0xb   :  { %296 = vmatpush3.bf16.msra.mxu0 %v321_v2  ;;  %318 = vmatpush3.bf16.msra.mxu1 %v321_v2 }
   0xe   :  { %298 = vmatmul.mubr.msk.bf16.vlgmr.msra.gmra.mrb[0].mxu0 %vm102_vm0, %v324_v5  ;;  %306 = vmatmul.mubr.msk.bf16.vlgmr.msra.gmra.mrb[0].mxu1 %vm102_vm0, %v325_v6 }
   0xf   :  { %301 = vmatprep.mubr.msk.bf16.mxu0 %vm102_vm0, %v326_v7  ;;  %309 = vmatprep.mubr.msk.bf16.mxu1 %vm102_vm0, %v327_v8 }
  0x16   :  { %302 = vmatmul.mubr.msk.bf16.gmra.mrb[4].mxu0 %vm102_vm0, %v328_v9  ;;  %310 = vmatmul.mubr.msk.bf16.gmra.mrb[4].mxu1 %vm102_vm0, %v329_v10 }
  0xe1   :  { %v299_v12 = vpop.f32.mrb[0].mxu0  ;;  %v307_v13 = vpop.f32.mrb[0].mxu1 }
  0xe2   :  { %v170_v14 = vadd.f32 %v299_v12, %v260_v11  ;;  %v202_v15 = vadd.f32 %v307_v13, %v260_v11  ;;  %v161_v16 = vpop.f32.mrb[1].mxu0  ;;  %v193_v17 = vpop.f32.mrb[1].mxu1 }
  0xe3   :  { %v162_v18 = vadd.f32 %v260_v11, %v161_v16  ;;  %v194_v19 = vadd.f32 %v260_v11, %v193_v17  ;;  %v300_v20 = vpop.f32.mrb[2].mxu0  ;;  %v308_v21 = vpop.f32.mrb[2].mxu1 }
  0xe4   :  { %v226_v22 = vmax.f32 %v170_v14, 0.0  ;;  %v234_v23 = vmax.f32 %v202_v15, 0.0  ;;  %v173_v24 = vadd.f32 %v300_v20, %v260_v11  ;;  %v205_v25 = vadd.f32 %v308_v21, %v260_v11  ;;  %v164_v26 = vpop.f32.mrb[3].mxu0  ;;  %v196_v27 = vpop.f32.mrb[3].mxu1 }
  0xe5   :  { %v224_v28 = vmax.f32 %v162_v18, 0.0  ;;  %v232_v29 = vmax.f32 %v194_v19, 0.0  ;;  %v165_v30 = vadd.f32 %v260_v11, %v164_v26  ;;  %v197_v31 = vadd.f32 %v260_v11, %v196_v27 }
  0xe6   :  { %242 = vst [vmem:[%s445_s3 + $0x10] sm:$0xff] %v226_v22  ;;  %250 = vst [vmem:[%s445_s3 + $0x50] sm:$0xff] %v234_v23  ;;  %v227_v32 = vmax.f32 %v173_v24, 0.0  ;;  %v235_v33 = vmax.f32 %v205_v25, 0.0 }
  0xe7   :  { %240 = vst [vmem:[%s445_s3] sm:$0xff] %v224_v28  ;;  %248 = vst [vmem:[%s445_s3 + $0x40] sm:$0xff] %v232_v29  ;;  %v225_v34 = vmax.f32 %v165_v30, 0.0  ;;  %v233_v35 = vmax.f32 %v197_v31, 0.0 }
  0xe8   :  { %243 = vst [vmem:[%s445_s3 + $0x18] sm:$0xff] %v227_v32  ;;  %251 = vst [vmem:[%s445_s3 + $0x58] sm:$0xff] %v235_v33 }
  0xe9   :  { %241 = vst [vmem:[%s445_s3 + $0x8] sm:$0xff] %v225_v34  ;;  %249 = vst [vmem:[%s445_s3 + $0x48] sm:$0xff] %v233_v35  ;;  %v303_v36 = vpop.f32.mrb[4].mxu0  ;;  %v311_v37 = vpop.f32.mrb[4].mxu1 }
  0xea   :  { %v186_v38 = vadd.f32 %v303_v36, %v260_v11  ;;  %v218_v39 = vadd.f32 %v311_v37, %v260_v11  ;;  %v177_v40 = vpop.f32.mrb[5].mxu0  ;;  %v209_v41 = vpop.f32.mrb[5].mxu1 }
  0xeb   :  { %v178_v42 = vadd.f32 %v260_v11, %v177_v40  ;;  %v210_v43 = vadd.f32 %v260_v11, %v209_v41  ;;  %v304_v44 = vpop.f32.mrb[6].mxu0  ;;  %v312_v45 = vpop.f32.mrb[6].mxu1 }
  0xec   :  { %v230_v46 = vmax.f32 %v186_v38, 0.0  ;;  %v238_v47 = vmax.f32 %v218_v39, 0.0  ;;  %v189_v48 = vadd.f32 %v304_v44, %v260_v11  ;;  %v221_v49 = vadd.f32 %v312_v45, %v260_v11  ;;  %v180_v50 = vpop.f32.mrb[7].mxu0  ;;  %v212_v51 = vpop.f32.mrb[7].mxu1 }
  0xed   :  { %v228_v52 = vmax.f32 %v178_v42, 0.0  ;;  %v236_v53 = vmax.f32 %v210_v43, 0.0  ;;  %v181_v54 = vadd.f32 %v260_v11, %v180_v50  ;;  %v213_v55 = vadd.f32 %v260_v11, %v212_v51 }
  0xee   :  { %246 = vst [vmem:[%s445_s3 + $0x30] sm:$0xff] %v230_v46  ;;  %254 = vst [vmem:[%s445_s3 + $0x70] sm:$0xff] %v238_v47  ;;  %v231_v56 = vmax.f32 %v189_v48, 0.0  ;;  %v239_v57 = vmax.f32 %v221_v49, 0.0 }
  0xef   :  { %244 = vst [vmem:[%s445_s3 + $0x20] sm:$0xff] %v228_v52  ;;  %252 = vst [vmem:[%s445_s3 + $0x60] sm:$0xff] %v236_v53  ;;  %v229_v58 = vmax.f32 %v181_v54, 0.0  ;;  %v237_v59 = vmax.f32 %v213_v55, 0.0 }
  0xf0   :  { %247 = vst [vmem:[%s445_s3 + $0x38] sm:$0xff] %v231_v56  ;;  %255 = vst [vmem:[%s445_s3 + $0x78] sm:$0xff] %v239_v57 }
  0xf1   :  { %245 = vst [vmem:[%s445_s3 + $0x28] sm:$0xff] %v229_v58  ;;  %253 = vst [vmem:[%s445_s3 + $0x68] sm:$0xff] %v237_v59 }

// kernel: model_forward.13
= control target key start
LH: loop header
LB: loop body
LE: loop exit
PB: predicated region body
PF: predicated region fallthrough
CT: control target
= control target key end

     0   :  { %s417_s1 = inlined_call_operand.vmem [shape: bf16[256,128], index: 1, kind: input, shape index: {}]   ;;  %s418_s0 = inlined_call_operand.vmem [shape: bf16[32,256], index: 0, kind: input, shape index: {}]   ;;  %s419_s2 = inlined_call_operand.vmem [shape: f32[1,128], index: 2, kind: input, shape index: {}]   ;;  %s420_s3 = inlined_call_operand.vmem [shape: f32[32,128], index: 3, kind: output, shape index: {}]  }
   0x1   :  { %v300_v0 = vld [vmem:[%s417_s1 + $0x40] sm:$0xff]   ;;  %v302_v2 = vld [vmem:[%s417_s1 + $0x48] sm:$0xff]   ;;  %v304_v4 = vld [vmem:[%s417_s1 + $0x50] sm:$0xff]  }
   0x2   :  { %v301_v1 = vld [vmem:[%s417_s1] sm:$0xff]   ;;  %256 = vmatprep.subr.bf16.mxu0 %v300_v0  ;;  %284 = vmatprep.subr.bf16.mxu1 %v300_v0  ;;  %v303_v3 = vld [vmem:[%s417_s1 + $0x8] sm:$0xff]   ;;  %v305_v5 = vld [vmem:[%s417_s1 + $0x10] sm:$0xff]  }
   0x3   :  { %257 = vmatpush3.bf16.msra.mxu0 %v301_v1  ;;  %292 = vmatpush3.bf16.msra.mxu1 %v301_v1  ;;  %v306_v6 = vld [vmem:[%s417_s1 + $0x58] sm:$0xff]   ;;  %v308_v8 = vld [vmem:[%s417_s1 + $0x60] sm:$0xff]   ;;  %v310_v10 = vld [vmem:[%s417_s1 + $0x68] sm:$0xff]  }
   0x4   :  { %258 = vmatprep.subr.bf16.mxu0 %v302_v2  ;;  %285 = vmatprep.subr.bf16.mxu1 %v302_v2  ;;  %v307_v7 = vld [vmem:[%s417_s1 + $0x18] sm:$0xff]   ;;  %v309_v9 = vld [vmem:[%s417_s1 + $0x20] sm:$0xff]   ;;  %v311_v13 = vld [vmem:[%s417_s1 + $0x28] sm:$0xff]  }
   0x5   :  { %v318_v11 = vld [vmem:[%s418_s0 + $0x4] ss:$8 sps:$4 sm:$0xff]   ;;  %v321_v12 = vld [vmem:[%s418_s0 + $0x14] ss:$8 sps:$4 sm:$0xff]   ;;  %v316_v18 = vld [vmem:[%s418_s0] ss:$8 sps:$4 sm:$0xff]  }
   0x6   :  { %v312_v14 = vld [vmem:[%s417_s1 + $0x70] sm:$0xff]   ;;  %206 = vmatprep.mubr.bf16.mxu0 %v318_v11  ;;  %214 = vmatprep.mubr.bf16.mxu1 %v321_v12  ;;  %v314_v16 = vld [vmem:[%s417_s1 + $0x78] sm:$0xff]   ;;  %v235_v22 = vld [vmem:[%s419_s2] ss:$0 sm:$0xff] }
   0x7   :  { %259 = vmatpush3.bf16.msra.mxu0 %v303_v3  ;;  %293 = vmatpush3.bf16.msra.mxu1 %v303_v3  ;;  %v313_v15 = vld [vmem:[%s417_s1 + $0x30] sm:$0xff]   ;;  %v315_v17 = vld [vmem:[%s417_s1 + $0x38] sm:$0xff]  }
   0x8   :  { %260 = vmatprep.subr.bf16.mxu0 %v304_v4  ;;  %286 = vmatprep.subr.bf16.mxu1 %v304_v4  ;;  %v319_v19 = vld [vmem:[%s418_s0 + $0x10] ss:$8 sps:$4 sm:$0xff]  }
   0xb   :  { %261 = vmatpush3.bf16.msra.mxu0 %v305_v5  ;;  %294 = vmatpush3.bf16.msra.mxu1 %v305_v5 }
   0xc   :  { %262 = vmatprep.subr.bf16.mxu0 %v306_v6  ;;  %287 = vmatprep.subr.bf16.mxu1 %v306_v6 }
   0xf   :  { %263 = vmatpush3.bf16.msra.mxu0 %v307_v7  ;;  %295 = vmatpush3.bf16.msra.mxu1 %v307_v7 }
  0x10   :  { %264 = vmatprep.subr.bf16.mxu0 %v308_v8  ;;  %288 = vmatprep.subr.bf16.mxu1 %v308_v8 }
  0x13   :  { %265 = vmatpush3.bf16.msra.mxu0 %v309_v9  ;;  %296 = vmatpush3.bf16.msra.mxu1 %v309_v9 }
  0x14   :  { %266 = vmatprep.subr.bf16.mxu0 %v310_v10  ;;  %289 = vmatprep.subr.bf16.mxu1 %v310_v10 }
  0x17   :  { %267 = vmatpush3.bf16.msra.mxu0 %v311_v13  ;;  %297 = vmatpush3.bf16.msra.mxu1 %v311_v13 }
  0x18   :  { %268 = vmatprep.subr.bf16.mxu0 %v312_v14  ;;  %290 = vmatprep.subr.bf16.mxu1 %v312_v14 }
  0x1b   :  { %269 = vmatpush3.bf16.msra.mxu0 %v313_v15  ;;  %298 = vmatpush3.bf16.msra.mxu1 %v313_v15 }
  0x1c   :  { %270 = vmatprep.subr.bf16.mxu0 %v314_v16  ;;  %291 = vmatprep.subr.bf16.mxu1 %v314_v16 }
  0x1f   :  { %271 = vmatpush3.bf16.msra.mxu0 %v315_v17  ;;  %299 = vmatpush3.bf16.msra.mxu1 %v315_v17 }
  0x22   :  { %207 = vmatmul.mubr.bf16.vlgmr.msra.gmra.mrb[0].mxu0 %v316_v18  ;;  %215 = vmatmul.mubr.bf16.vlgmr.msra.gmra.mrb[0].mxu1 %v319_v19 }
  0xf5   :  { %v272_v20 = vpop.f32.mrb[0].mxu0  ;;  %v278_v21 = vpop.f32.mrb[0].mxu1 }
  0xf6   :  { %v273_v23 = vpop.f32.mrb[1].mxu0  ;;  %v279_v24 = vpop.f32.mrb[1].mxu1 }
  0xf7   :  { %v274_v25 = vadd.f32 %v273_v23, %v272_v20  ;;  %v280_v26 = vadd.f32 %v279_v24, %v278_v21  ;;  %v275_v27 = vpop.f32.mrb[2].mxu0  ;;  %v281_v28 = vpop.f32.mrb[2].mxu1 }
  0xf8   :  { %v276_v29 = vpop.f32.mrb[3].mxu0  ;;  %v282_v30 = vpop.f32.mrb[3].mxu1 }
  0xf9   :  { %v209_v31 = vadd.f32 %v274_v25, %v235_v22  ;;  %v217_v32 = vadd.f32 %v280_v26, %v235_v22  ;;  %v277_v33 = vadd.f32 %v276_v29, %v275_v27  ;;  %v283_v34 = vadd.f32 %v282_v30, %v281_v28 }
  0xfb   :  { %v223_v35 = vmax.f32 %v209_v31, 0.0  ;;  %v225_v36 = vmax.f32 %v217_v32, 0.0  ;;  %v212_v37 = vadd.f32 %v277_v33, %v235_v22  ;;  %v220_v38 = vadd.f32 %v283_v34, %v235_v22 }
  0xfd   :  { %227 = vst [vmem:[%s420_s3] sm:$0xff] %v223_v35  ;;  %229 = vst [vmem:[%s420_s3 + $0x10] sm:$0xff] %v225_v36  ;;  %v224_v39 = vmax.f32 %v212_v37, 0.0  ;;  %v226_v40 = vmax.f32 %v220_v38, 0.0 }
  0xff   :  { %228 = vst [vmem:[%s420_s3 + $0x8] sm:$0xff] %v224_v39  ;;  %230 = vst [vmem:[%s420_s3 + $0x18] sm:$0xff] %v226_v40 }

// kernel: model_forward.14
= control target key start
LH: loop header
LB: loop body
LE: loop exit
PB: predicated region body
PF: predicated region fallthrough
CT: control target
= control target key end

     0   :  { %vm204_vm0 = vcmask 261120   ;;  %s517_s1 = inlined_call_operand.vmem [shape: bf16[288,128], index: 1, kind: input, shape index: {}]   ;;  %s518_s0 = inlined_call_operand.vmem [shape: bf16[32,288], index: 0, kind: input, shape index: {}]   ;;  %s519_s2 = inlined_call_operand.vmem [shape: f32[1,128], index: 2, kind: input, shape index: {}]   ;;  %s520_s3 = inlined_call_operand.vmem [shape: f32[32,128], index: 3, kind: output, shape index: {}]  }
   0x1   :  { %v384_v0 = vld [vmem:[%s517_s1 + $0x40] sm:$0xff]   ;;  %v386_v2 = vld [vmem:[%s517_s1 + $0x48] sm:$0xff]   ;;  %v388_v4 = vld [vmem:[%s517_s1 + $0x50] sm:$0xff]  }
   0x2   :  { %v385_v1 = vld [vmem:[%s517_s1] sm:$0xff]   ;;  %344 = vmatprep.subr.bf16.mxu0 %v384_v0  ;;  %v387_v3 = vld [vmem:[%s517_s1 + $0x8] sm:$0xff]   ;;  %v389_v5 = vld [vmem:[%s517_s1 + $0x10] sm:$0xff]  }
   0x3   :  { %345 = vmatpush3.bf16.msra.mxu0 %v385_v1  ;;  %v390_v6 = vld [vmem:[%s517_s1 + $0x58] sm:$0xff]   ;;  %v392_v8 = vld [vmem:[%s517_s1 + $0x60] sm:$0xff]   ;;  %v394_v11 = vld [vmem:[%s517_s1 + $0x68] sm:$0xff]  }
   0x4   :  { %346 = vmatprep.subr.bf16.mxu0 %v386_v2  ;;  %v391_v7 = vld [vmem:[%s517_s1 + $0x18] sm:$0xff]   ;;  %v393_v9 = vld [vmem:[%s517_s1 + $0x20] sm:$0xff]   ;;  %v395_v12 = vld [vmem:[%s517_s1 + $0x28] sm:$0xff]  }
   0x5   :  { %v399_v10 = vld [vmem:[%s517_s1 + $0x80] sm:$0xff]   ;;  %v396_v13 = vld [vmem:[%s517_s1 + $0x70] sm:$0xff]   ;;  %v404_v15 = vld [vmem:[%s517_s1 + $0x88] sm:$0xff]  }
   0x6   :  { %376 = vmatprep.subr.bf16.mxu1 %v399_v10  ;;  %v403_v14 = vld [vmem:[%s518_s0 + $0x4] ss:$12 sps:$4 sm:$0xff]   ;;  %v405_v16 = vld [vmem:[%s518_s0 + $0x8] ss:$12 sps:$4 sm:$0xff]   ;;  %v406_v17 = vld [vmem:[%s518_s0 + $0x20] ss:$12 sps:$4 sm:$0xff]  }
   0x7   :  { %347 = vmatpush3.bf16.msra.mxu0 %v387_v3  ;;  %377 = vmatpush3.bf16.msra.mxu1 %v399_v10  ;;  %v397_v18 = vld [vmem:[%s517_s1 + $0x30] sm:$0xff]   ;;  %v398_v19 = vld [vmem:[%s517_s1 + $0x78] sm:$0xff]   ;;  %v401_v21 = vld [vmem:[%s518_s0] ss:$12 sps:$4 sm:$0xff]  }
   0x8   :  { %348 = vmatprep.subr.bf16.mxu0 %v388_v4  ;;  %243 = vmatprep.mubr.bf16.mxu0 %v403_v14  ;;  %v400_v20 = vld [vmem:[%s517_s1 + $0x38] sm:$0xff]   ;;  %v317_v30 = vld [vmem:[%s519_s2] ss:$0 sm:$0xff] }
   0x9   :  { %378 = vmatprep.subr.bf16.mxu1 %v404_v15  ;;  %380 = vmatprep.mubr.msk.bf16.mxu1 %vm204_vm0, %v405_v16  ;;  %v407_v22 = vld [vmem:[%s518_s0 + $0x1c] ss:$12 sps:$4 sm:$0xff]   ;;  %v409_v23 = vld [vmem:[%s518_s0 + $0x18] ss:$12 sps:$4 sm:$0xff]  }
   0xb   :  { %349 = vmatpush3.bf16.msra.mxu0 %v389_v5  ;;  %379 = vmatpush3.bf16.msra.mxu1 %v404_v15 }
   0xc   :  { %350 = vmatprep.subr.bf16.mxu0 %v390_v6 }
   0xe   :  { %381 = vmatmul.mubr.msk.bf16.vlgmr.msra.gmra.mrb[0].mxu1 %vm204_vm0, %v406_v17 }
   0xf   :  { %351 = vmatpush3.bf16.msra.mxu0 %v391_v7 }
  0x10   :  { %352 = vmatprep.subr.bf16.mxu0 %v392_v8 }
  0x13   :  { %353 = vmatpush3.bf16.msra.mxu0 %v393_v9 }
  0x14   :  { %354 = vmatprep.subr.bf16.mxu0 %v394_v11 }
  0x17   :  { %355 = vmatpush3.bf16.msra.mxu0 %v395_v12 }
  0x18   :  { %356 = vmatprep.subr.bf16.mxu0 %v396_v13 }
  0x1b   :  { %357 = vmatpush3.bf16.msra.mxu0 %v397_v18 }
  0x1c   :  { %358 = vmatprep.subr.bf16.mxu0 %v398_v19 }
  0x1f   :  { %359 = vmatpush3.bf16.msra.mxu0 %v400_v20 }
  0x22   :  { %244 = vmatmul.mubr.bf16.vlgmr.msra.gmra.mrb[0].mxu0 %v401_v21 }
  0x23   :  { %251 = vmatprep.mubr.bf16.mxu0 %v407_v22 }
  0x2a   :  { %252 = vmatmul.mubr.bf16.gmra.mrb[4].mxu0 %v409_v23 }
  0xe1   :  { %v382_v24 = vpop.f32.mrb[0].mxu1 }
  0xe2   :  { %v294_v25 = vpop.f32.mrb[1].mxu1 }
  0xe3   :  { %v383_v26 = vpop.f32.mrb[2].mxu1 }
  0xe4   :  { %v297_v27 = vpop.f32.mrb[3].mxu1 }
  0xf5   :  { %v360_v28 = vpop.f32.mrb[0].mxu0 }
  0xf6   :  { %v361_v29 = vpop.f32.mrb[1].mxu0 }
  0xf7   :  { %v362_v31 = vadd.f32 %v361_v29, %v360_v28  ;;  %v363_v32 = vpop.f32.mrb[2].mxu0 }
  0xf8   :  { %v364_v33 = vpop.f32.mrb[3].mxu0 }
  0xf9   :  { %v365_v34 = vadd.f32 %v364_v33, %v363_v32  ;;  %v246_v35 = vadd.f32 %v362_v31, %v317_v30 }
  0xfb   :  { %v295_v36 = vadd.f32 %v294_v25, %v246_v35  ;;  %v249_v37 = vadd.f32 %v365_v34, %v317_v30 }
  0xfd   :  { %309 = vst [vmem:[%s520_s3] sm:$0xff] %v295_v36  ;;  %v298_v38 = vadd.f32 %v297_v27, %v249_v37  ;;  %v366_v39 = vpop.f32.mrb[4].mxu0 }
  0xfe   :  { %v367_v40 = vpop.f32.mrb[5].mxu0 }
  0xff   :  { %310 = vst [vmem:[%s520_s3 + $0x8] sm:$0xff] %v298_v38  ;;  %v368_v41 = vadd.f32 %v367_v40, %v366_v39  ;;  %v369_v42 = vpop.f32.mrb[6].mxu0 }
 0x100   :  { %v370_v43 = vpop.f32.mrb[7].mxu0 }
 0x101   :  { %v254_v44 = vadd.f32 %v368_v41, %v317_v30  ;;  %v371_v45 = vadd.f32 %v370_v43, %v369_v42 }
 0x103   :  { %v303_v46 = vadd.f32 %v382_v24, %v254_v44  ;;  %v257_v47 = vadd.f32 %v371_v45, %v317_v30 }
 0x105   :  { %311 = vst [vmem:[%s520_s3 + $0x10] sm:$0xff] %v303_v46  ;;  %v306_v48 = vadd.f32 %v383_v26, %v257_v47 }
 0x107   :  { %312 = vst [vmem:[%s520_s3 + $0x18] sm:$0xff] %v306_v48 }

// kernel: model_forward.17
= control target key start
LH: loop header
LB: loop body
LE: loop exit
PB: predicated region body
PF: predicated region fallthrough
CT: control target
= control target key end

     0   :  { %v142_v5 = vmov 0   ;;  %vm56_vm0 = vcmask 261120   ;;  %s196_s1 = inlined_call_operand.vmem [shape: bf16[32,128], index: 1, kind: input, shape index: {}]   ;;  %s197_s0 = inlined_call_operand.vmem [shape: bf16[32,32], index: 0, kind: input, shape index: {}]   ;;  %s198_s2 = inlined_call_operand.vmem [shape: f32[1,128], index: 2, kind: input, shape index: {}]   ;;  %s199_s3 = inlined_call_operand.vmem [shape: f32[32,128], index: 3, kind: output, shape index: {}]  }
   0x1   :  { %v140_v0 = vld [vmem:[%s196_s1] sm:$0xff]   ;;  %v141_v1 = vld [vmem:[%s196_s1 + $0x8] sm:$0xff]  }
   0x2   :  { %131 = vmatprep.subr.bf16.mxu0 %v140_v0  ;;  %v15_v2 = vld [vmem:[%s197_s0] sm:$0xf]  ;;  %v16_v3 = vld [vmem:[%s197_s0 + $0x4] sm:$0xf]  ;;  %v17_v4 = vld [vmem:[%s197_s0 + $0x8] sm:$0xf] }
   0x3   :  { %132 = vmatpush3.bf16.msra.mxu0 %v140_v0  ;;  %v19_v6 = vmax.bf16 %v142_v5, %v15_v2  ;;  %v20_v7 = vmax.bf16 %v142_v5, %v16_v3  ;;  %v18_v8 = vld [vmem:[%s197_s0 + $0xc] sm:$0xf]  ;;  %v21_v9 = vmax.bf16 %v142_v5, %v17_v4  ;;  %v120_v13 = vld [vmem:[%s198_s2] ss:$0 sm:$0xff] }
   0x4   :  { %133 = vmatprep.subr.bf16.mxu0 %v141_v1  ;;  %v22_v10 = vmax.bf16 %v142_v5, %v18_v8 }
   0x5   :  { %v121_v11 = vcombine.low %v19_v6, %v20_v7 }
   0x6   :  { %v122_v12 = vcombine.low %v21_v9, %v22_v10 }
   0x7   :  { %134 = vmatpush3.bf16.msra.mxu0 %v141_v1  ;;  %135 = vmatprep.mubr.msk.bf16.mxu0 %vm56_vm0, %v121_v11 }
   0xa   :  { %136 = vmatmul.mubr.msk.bf16.vlgmr.msra.gmra.mrb[0].mxu0 %vm56_vm0, %v122_v12 }
  0xdd   :  { %v137_v14 = vpop.f32.mrb[0].mxu0 }
  0xde   :  { %v106_v15 = vadd.f32 %v137_v14, %v120_v13  ;;  %v97_v16 = vpop.f32.mrb[1].mxu0 }
  0xdf   :  { %v98_v17 = vadd.f32 %v120_v13, %v97_v16  ;;  %v138_v18 = vpop.f32.mrb[2].mxu0 }
  0xe0   :  { %114 = vst [vmem:[%s199_s3 + $0x10] sm:$0xff] %v106_v15  ;;  %v109_v19 = vadd.f32 %v138_v18, %v120_v13  ;;  %v100_v20 = vpop.f32.mrb[3].mxu0 }
  0xe1   :  { %112 = vst [vmem:[%s199_s3] sm:$0xff] %v98_v17  ;;  %v101_v21 = vadd.f32 %v120_v13, %v100_v20 }
  0xe2   :  { %115 = vst [vmem:[%s199_s3 + $0x18] sm:$0xff] %v109_v19 }
  0xe3   :  { %113 = vst [vmem:[%s199_s3 + $0x8] sm:$0xff] %v101_v21 }

// kernel: model_forward.15
= control target key start
LH: loop header
LB: loop body
LE: loop exit
PB: predicated region body
PF: predicated region fallthrough
CT: control target
= control target key end

     0   :  { %v579_v17 = vmov 0   ;;  %vm208_vm0 = vcmask 261120   ;;  %s731_s1 = inlined_call_operand.vmem [shape: bf16[288,128], index: 1, kind: input, shape index: {}]   ;;  %s732_s0 = inlined_call_operand.vmem [shape: bf16[32,288], index: 0, kind: input, shape index: {}]   ;;  %s733_s2 = inlined_call_operand.vmem [shape: bf16[128,128], index: 2, kind: input, shape index: {}]   ;;  %s734_s3 = inlined_call_operand.vmem [shape: f32[32,128], index: 3, kind: input, shape index: {}]   ;;  %s735_s4 = inlined_call_operand.vmem [shape: f32[32,128], index: 4, kind: output, shape index: {}]  }
   0x1   :  { %v553_v0 = vld [vmem:[%s731_s1 + $0x40] sm:$0xff]   ;;  %v555_v2 = vld [vmem:[%s731_s1 + $0x48] sm:$0xff]   ;;  %v557_v4 = vld [vmem:[%s731_s1 + $0x50] sm:$0xff]  }
   0x2   :  { %v554_v1 = vld [vmem:[%s731_s1] sm:$0xff]   ;;  %482 = vmatprep.subr.bf16.mxu0 %v553_v0  ;;  %v556_v3 = vld [vmem:[%s731_s1 + $0x8] sm:$0xff]   ;;  %v558_v5 = vld [vmem:[%s731_s1 + $0x10] sm:$0xff]  }
   0x3   :  { %483 = vmatpush3.bf16.msra.mxu0 %v554_v1  ;;  %v559_v6 = vld [vmem:[%s731_s1 + $0x58] sm:$0xff]   ;;  %v561_v8 = vld [vmem:[%s731_s1 + $0x60] sm:$0xff]   ;;  %v563_v11 = vld [vmem:[%s731_s1 + $0x68] sm:$0xff]  }
   0x4   :  { %484 = vmatprep.subr.bf16.mxu0 %v555_v2  ;;  %v560_v7 = vld [vmem:[%s731_s1 + $0x18] sm:$0xff]   ;;  %v567_v9 = vld [vmem:[%s731_s1 + $0x80] sm:$0xff]   ;;  %v564_v12 = vld [vmem:[%s731_s1 + $0x28] sm:$0xff]  }
   0x5   :  { %v562_v10 = vld [vmem:[%s731_s1 + $0x20] sm:$0xff]   ;;  %524 = vmatprep.subr.bf16.mxu1 %v567_v9  ;;  %v570_v13 = vld [vmem:[%s731_s1 + $0x88] sm:$0xff]   ;;  %v21_v20 = vld [vmem:[%s732_s0 + $0x14] sm:$0xf] }
   0x6   :  { %525 = vmatpush3.bf16.msra.mxu1 %v567_v9  ;;  %v18_v14 = vld [vmem:[%s732_s0] sm:$0xff]  ;;  %v20_v15 = vld [vmem:[%s732_s0 + $0xc] sm:$0xff]  ;;  %v19_v16 = vld [vmem:[%s732_s0 + $0x8] sm:$0xf]  ;;  %v29_v25 = vmax.bf16 %v579_v17, %v21_v20 }
   0x7   :  { %485 = vmatpush3.bf16.msra.mxu0 %v556_v3  ;;  %526 = vmatprep.subr.bf16.mxu1 %v570_v13  ;;  %v26_v18 = vmax.bf16 %v579_v17, %v18_v14  ;;  %v28_v19 = vmax.bf16 %v579_v17, %v20_v15  ;;  %v27_v21 = vmax.bf16 %v579_v17, %v19_v16  ;;  %v23_v22 = vld [vmem:[%s732_s0 + $0x20] sm:$0xf]  ;;  %v25_v23 = vld [vmem:[%s732_s0 + $0x2c] sm:$0xf]  ;;  %v565_v24 = vld [vmem:[%s731_s1 + $0x70] sm:$0xff]  }
   0x8   :  { %486 = vmatprep.subr.bf16.mxu0 %v557_v4  ;;  %v31_v26 = vmax.bf16 %v579_v17, %v23_v22  ;;  %v33_v27 = vmax.bf16 %v579_v17, %v25_v23  ;;  %v566_v28 = vld [vmem:[%s731_s1 + $0x30] sm:$0xff]   ;;  %v571_v30 = vld [vmem:[%s733_s2] sm:$0xff]   ;;  %v568_v31 = vld [vmem:[%s731_s1 + $0x78] sm:$0xff]  }
   0x9   :  { %v449_v29 = vcombine.high %v26_v18, %v28_v19  ;;  %v450_v32 = vcombine.low %v27_v21, %v29_v25  ;;  %v22_v34 = vld [vmem:[%s732_s0 + $0x18] sm:$0xff]  ;;  %v24_v35 = vld [vmem:[%s732_s0 + $0x24] sm:$0xff]  ;;  %v573_v40 = vld [vmem:[%s733_s2 + $0x10] sm:$0xff]   ;;  %v448_v41 = vcombine.low %v26_v18, %v28_v19 }
   0xa   :  { %527 = vmatpush3.bf16.msra.mxu1 %v570_v13  ;;  %v453_v33 = vcombine.low %v31_v26, %v33_v27  ;;  %v572_v36 = vld [vmem:[%s733_s2 + $0x8] sm:$0xff]   ;;  %v569_v37 = vld [vmem:[%s731_s1 + $0x38] sm:$0xff]   ;;  %v30_v38 = vmax.bf16 %v579_v17, %v22_v34  ;;  %v32_v39 = vmax.bf16 %v579_v17, %v24_v35  ;;  %v575_v45 = vld [vmem:[%s733_s2 + $0x20] sm:$0xff]  }
   0xb   :  { %487 = vmatpush3.bf16.msra.mxu0 %v558_v5  ;;  %247 = vmatprep.mubr.bf16.mxu0 %v449_v29  ;;  %v574_v44 = vld [vmem:[%s733_s2 + $0x18] sm:$0xff]   ;;  %v576_v46 = vld [vmem:[%s733_s2 + $0x28] sm:$0xff]   ;;  %v577_v47 = vld [vmem:[%s733_s2 + $0x30] sm:$0xff]  }
   0xc   :  { %488 = vmatprep.subr.bf16.mxu0 %v559_v6  ;;  %528 = vmatprep.mubr.msk.bf16.mxu1 %vm208_vm0, %v450_v32  ;;  %v452_v42 = vcombine.high %v30_v38, %v32_v39  ;;  %v451_v43 = vcombine.low %v30_v38, %v32_v39  ;;  %v578_v48 = vld [vmem:[%s733_s2 + $0x38] sm:$0xff]   ;;  %v433_v17 = vld [vmem:[%s734_s3 + $0x8] sm:$0xff] }
   0xd   :  { %529 = vmatmul.mubr.msk.bf16.vlgmr.msra.gmra.mrb[0].mxu1 %vm208_vm0, %v453_v33  ;;  %532 = vmatprep.subr.bf16.mxu1 %v571_v30  ;;  %v435_v14 = vld [vmem:[%s734_s3 + $0x18] sm:$0xff] }
   0xe   :  { %533 = vmatpush3.bf16.msra.mxu1 %v571_v30 }
   0xf   :  { %489 = vmatpush3.bf16.msra.mxu0 %v560_v7  ;;  %534 = vmatprep.subr.bf16.mxu1 %v572_v36 }
  0x10   :  { %490 = vmatprep.subr.bf16.mxu0 %v561_v8 }
  0x12   :  { %535 = vmatpush3.bf16.msra.mxu1 %v572_v36 }
  0x13   :  { %491 = vmatpush3.bf16.msra.mxu0 %v562_v10  ;;  %536 = vmatprep.subr.bf16.mxu1 %v573_v40 }
  0x14   :  { %492 = vmatprep.subr.bf16.mxu0 %v563_v11  ;;  %v434_v11 = vld [vmem:[%s734_s3 + $0x10] sm:$0xff] }
  0x16   :  { %537 = vmatpush3.bf16.msra.mxu1 %v573_v40 }
  0x17   :  { %493 = vmatpush3.bf16.msra.mxu0 %v564_v12  ;;  %538 = vmatprep.subr.bf16.mxu1 %v574_v44  ;;  %v432_v12 = vld [vmem:[%s734_s3] sm:$0xff] }
  0x18   :  { %494 = vmatprep.subr.bf16.mxu0 %v565_v24 }
  0x1a   :  { %539 = vmatpush3.bf16.msra.mxu1 %v574_v44 }
  0x1b   :  { %495 = vmatpush3.bf16.msra.mxu0 %v566_v28  ;;  %540 = vmatprep.subr.bf16.mxu1 %v575_v45 }
  0x1c   :  { %496 = vmatprep.subr.bf16.mxu0 %v568_v31 }
  0x1e   :  { %541 = vmatpush3.bf16.msra.mxu1 %v575_v45 }
  0x1f   :  { %497 = vmatpush3.bf16.msra.mxu0 %v569_v37  ;;  %542 = vmatprep.subr.bf16.mxu1 %v576_v46 }
  0x22   :  { %248 = vmatmul.mubr.bf16.vlgmr.msra.gmra.mrb[0].mxu0 %v448_v41  ;;  %543 = vmatpush3.bf16.msra.mxu1 %v576_v46 }
  0x23   :  { %255 = vmatprep.mubr.bf16.mxu0 %v452_v42  ;;  %544 = vmatprep.subr.bf16.mxu1 %v577_v47 }
  0x26   :  { %545 = vmatpush3.bf16.msra.mxu1 %v577_v47 }
  0x27   :  { %546 = vmatprep.subr.bf16.mxu1 %v578_v48 }
  0x2a   :  { %256 = vmatmul.mubr.bf16.gmra.mrb[4].mxu0 %v451_v43  ;;  %547 = vmatpush3.bf16.msra.mxu1 %v578_v48 }
  0xe0   :  { %v530_v49 = vpop.f32.mrb[0].mxu1 }
  0xe1   :  { %v298_v50 = vpop.f32.mrb[1].mxu1 }
  0xe2   :  { %v531_v51 = vpop.f32.mrb[2].mxu1 }
  0xe3   :  { %v301_v52 = vpop.f32.mrb[3].mxu1 }
  0xf5   :  { %v498_v53 = vpop.f32.mrb[0].mxu0 }
  0xf6   :  { %v499_v54 = vpop.f32.mrb[1].mxu0 }
  0xf7   :  { %v500_v55 = vadd.f32 %v499_v54, %v498_v53  ;;  %v501_v56 = vpop.f32.mrb[2].mxu0 }
  0xf8   :  { %v502_v57 = vpop.f32.mrb[3].mxu0 }
  0xf9   :  { %v503_v58 = vadd.f32 %v502_v57, %v501_v56  ;;  %v299_v59 = vadd.f32 %v500_v55, %v298_v50 }
  0xfb   :  { %v302_v60 = vadd.f32 %v503_v58, %v301_v52  ;;  %v313_v61 = vmax.f32 %v299_v59, 0.0 }
  0xfd   :  { %v314_v62 = vmax.f32 %v302_v60, 0.0  ;;  %v504_v63 = vpop.f32.mrb[4].mxu0 }
  0xfe   :  { %v505_v0 = vpop.f32.mrb[5].mxu0 }
  0xff   :  { %v317_v1 = vpack.c.bf16 %v314_v62, %v313_v61  ;;  %v506_v2 = vadd.f32 %v505_v0, %v504_v63  ;;  %v507_v3 = vpop.f32.mrb[6].mxu0 }
 0x100   :  { %v508_v4 = vpop.f32.mrb[7].mxu0 }
 0x101   :  { %v307_v5 = vadd.f32 %v530_v49, %v506_v2  ;;  %v509_v6 = vadd.f32 %v508_v4, %v507_v3  ;;  %548 = vmatprep.mubr.bf16.mxu1 %v317_v1 }
 0x103   :  { %v310_v7 = vadd.f32 %v531_v51, %v509_v6  ;;  %v315_v8 = vmax.f32 %v307_v5, 0.0 }
 0x105   :  { %v316_v9 = vmax.f32 %v310_v7, 0.0 }
 0x107   :  { %v318_v10 = vpack.c.bf16 %v316_v9, %v315_v8 }
 0x109   :  { %549 = vmatmul.mubr.bf16.vlgmr.msra.gmra.mrb[4].mxu1 %v318_v10 }
 0x1dc   :  { %v550_v13 = vpop.f32.mrb[4].mxu1 }
 0x1dd   :  { %v438_v15 = vadd.f32 %v550_v13, %v434_v11  ;;  %v417_v16 = vpop.f32.mrb[5].mxu1 }
 0x1de   :  { %v436_v18 = vadd.f32 %v432_v12, %v417_v16  ;;  %v551_v19 = vpop.f32.mrb[6].mxu1 }
 0x1df   :  { %442 = vst [vmem:[%s735_s4 + $0x10] sm:$0xff] %v438_v15  ;;  %v439_v20 = vadd.f32 %v551_v19, %v435_v14  ;;  %v420_v21 = vpop.f32.mrb[7].mxu1 }
 0x1e0   :  { %440 = vst [vmem:[%s735_s4] sm:$0xff] %v436_v18  ;;  %v437_v22 = vadd.f32 %v433_v17, %v420_v21 }
 0x1e1   :  { %443 = vst [vmem:[%s735_s4 + $0x18] sm:$0xff] %v439_v20 }
 0x1e2   :  { %441 = vst [vmem:[%s735_s4 + $0x8] sm:$0xff] %v437_v22 }

// kernel: model_forward.19
= control target key start
LH: loop header
LB: loop body
LE: loop exit
PB: predicated region body
PF: predicated region fallthrough
CT: control target
= control target key end

     0   :  { %v230_v0 = vmov 0   ;;  %vm116_vm0 = vcmask 130048   ;;  %s305_s1 = inlined_call_operand.vmem [shape: bf16[144,128], index: 1, kind: input, shape index: {}]   ;;  %s306_s0 = inlined_call_operand.vmem [shape: bf16[32,144], index: 0, kind: input, shape index: {}]   ;;  %s307_s2 = inlined_call_operand.vmem [shape: f32[1,128], index: 2, kind: input, shape index: {}]   ;;  %s308_s3 = inlined_call_operand.vmem [shape: f32[32,128], index: 3, kind: output, shape index: {}]  }
   0x1   :  { %123 = vmatprep.subr.bf16.mxu0 %v230_v0  ;;  %196 = vmatprep.subr.bf16.mxu1 %v230_v0  ;;  %v215_v1 = vld [vmem:[%s305_s1] sm:$0xff]   ;;  %v216_v2 = vld [vmem:[%s305_s1 + $0x8] sm:$0xff]   ;;  %v217_v3 = vld [vmem:[%s305_s1 + $0x10] sm:$0xff]  }
   0x2   :  { %124 = vmatpush1.bf16.msra.mxu0 %v215_v1  ;;  %205 = vmatpush1.bf16.msra.mxu1 %v215_v1  ;;  %v218_v4 = vld [vmem:[%s305_s1 + $0x18] sm:$0xff]   ;;  %v226_v5 = vld [vmem:[%s306_s0 + $0x4] ss:$8 sps:$4 sm:$0xff]   ;;  %v221_v9 = vld [vmem:[%s305_s1 + $0x30] sm:$0xff]  }
   0x3   :  { %125 = vmatprep.subr.bf16.mxu0 %v230_v0  ;;  %197 = vmatprep.subr.bf16.mxu1 %v230_v0  ;;  %v229_v6 = vld [vmem:[%s306_s0 + $0x14] ss:$8 sps:$4 sm:$0xff]   ;;  %v219_v7 = vld [vmem:[%s305_s1 + $0x20] sm:$0xff]   ;;  %v220_v8 = vld [vmem:[%s305_s1 + $0x28] sm:$0xff]  }
   0x4   :  { %194 = vmatprep.mubr.msk.bf16.mxu0 %vm116_vm0, %v226_v5  ;;  %195 = vmatprep.mubr.msk.bf16.mxu1 %vm116_vm0, %v229_v6  ;;  %v222_v10 = vld [vmem:[%s305_s1 + $0x38] sm:$0xff]   ;;  %v223_v11 = vld [vmem:[%s305_s1 + $0x40] sm:$0xff]  }
   0x5   :  { %v224_v12 = vld [vmem:[%s306_s0] ss:$8 sps:$4 sm:$0xff]   ;;  %v227_v13 = vld [vmem:[%s306_s0 + $0x10] ss:$8 sps:$4 sm:$0xff]  }
   0x6   :  { %126 = vmatpush1.bf16.msra.mxu0 %v216_v2  ;;  %206 = vmatpush1.bf16.msra.mxu1 %v216_v2  ;;  %v180_v14 = vld [vmem:[%s307_s2] ss:$0 sm:$0xff] }
   0x7   :  { %127 = vmatprep.subr.bf16.mxu0 %v230_v0  ;;  %198 = vmatprep.subr.bf16.mxu1 %v230_v0 }
   0xa   :  { %128 = vmatpush1.bf16.msra.mxu0 %v217_v3  ;;  %207 = vmatpush1.bf16.msra.mxu1 %v217_v3 }
   0xb   :  { %129 = vmatprep.subr.bf16.mxu0 %v230_v0  ;;  %199 = vmatprep.subr.bf16.mxu1 %v230_v0 }
   0xe   :  { %130 = vmatpush1.bf16.msra.mxu0 %v218_v4  ;;  %208 = vmatpush1.bf16.msra.mxu1 %v218_v4 }
   0xf   :  { %131 = vmatprep.subr.bf16.mxu0 %v230_v0  ;;  %200 = vmatprep.subr.bf16.mxu1 %v230_v0 }
  0x12   :  { %132 = vmatpush1.bf16.msra.mxu0 %v219_v7  ;;  %209 = vmatpush1.bf16.msra.mxu1 %v219_v7 }
  0x13   :  { %133 = vmatprep.subr.bf16.mxu0 %v230_v0  ;;  %201 = vmatprep.subr.bf16.mxu1 %v230_v0 }
  0x16   :  { %134 = vmatpush1.bf16.msra.mxu0 %v220_v8  ;;  %210 = vmatpush1.bf16.msra.mxu1 %v220_v8 }
  0x17   :  { %135 = vmatprep.subr.bf16.mxu0 %v230_v0  ;;  %202 = vmatprep.subr.bf16.mxu1 %v230_v0 }
  0x1a   :  { %136 = vmatpush1.bf16.msra.mxu0 %v221_v9  ;;  %211 = vmatpush1.bf16.msra.mxu1 %v221_v9 }
  0x1b   :  { %137 = vmatprep.subr.bf16.mxu0 %v230_v0  ;;  %203 = vmatprep.subr.bf16.mxu1 %v230_v0 }
  0x1e   :  { %138 = vmatpush1.bf16.msra.mxu0 %v222_v10  ;;  %212 = vmatpush1.bf16.msra.mxu1 %v222_v10 }
  0x1f   :  { %139 = vmatprep.subr.bf16.mxu0 %v230_v0  ;;  %204 = vmatprep.subr.bf16.mxu1 %v230_v0 }
  0x22   :  { %140 = vmatpush1.bf16.msra.mxu0 %v223_v11  ;;  %213 = vmatpush1.bf16.msra.mxu1 %v223_v11 }
  0x25   :  { %156 = vmatmul.mubr.bf16.vlgmr.msra.gmra.mrb[0].mxu0 %v224_v12  ;;  %164 = vmatmul.mubr.bf16.vlgmr.msra.gmra.mrb[0].mxu1 %v227_v13 }
  0xf8   :  { %v157_v15 = vpop.f32.mrb[0].mxu0  ;;  %v165_v16 = vpop.f32.mrb[0].mxu1 }
  0xf9   :  { %v158_v17 = vadd.f32 %v180_v14, %v157_v15  ;;  %v166_v18 = vadd.f32 %v180_v14, %v165_v16  ;;  %v159_v19 = vpop.f32.mrb[1].mxu0  ;;  %v167_v20 = vpop.f32.mrb[1].mxu1 }
  0xfa   :  { %v160_v21 = vpop.f32.mrb[2].mxu0  ;;  %v168_v22 = vpop.f32.mrb[2].mxu1 }
  0xfb   :  { %172 = vst [vmem:[%s308_s3] sm:$0xff] %v158_v17  ;;  %174 = vst [vmem:[%s308_s3 + $0x10] sm:$0xff] %v166_v18  ;;  %v161_v23 = vadd.f32 %v180_v14, %v160_v21  ;;  %v169_v24 = vadd.f32 %v180_v14, %v168_v22  ;;  %v162_v25 = vpop.f32.mrb[3].mxu0  ;;  %v170_v26 = vpop.f32.mrb[3].mxu1 }
  0xfd   :  { %173 = vst [vmem:[%s308_s3 + $0x8] sm:$0xff] %v161_v23  ;;  %175 = vst [vmem:[%s308_s3 + $0x18] sm:$0xff] %v169_v24 }

// kernel: tile.13
= control target key start
LH: loop header
LB: loop body
LE: loop exit
PB: predicated region body
PF: predicated region fallthrough
CT: control target
= control target key end

     0   :  { %s22_s0 = inlined_call_operand.vmem [shape: f32[16], index: 0, kind: input, shape index: {}]   ;;  %s23_s1 = inlined_call_operand.vmem [shape: f32[4,16], index: 1, kind: output, shape index: {}]  }
   0x1   :  { %v4_v0 = vld [vmem:[%s22_s0] ss:$0 sm:$0xff] }
   0x2   :  { %5 = vst [vmem:[%s23_s1] sm:$0xf] %v4_v0 }

// kernel: tile.14
= control target key start
LH: loop header
LB: loop body
LE: loop exit
PB: predicated region body
PF: predicated region fallthrough
CT: control target
= control target key end

     0   :  { %vm7_vm0 = vcmask 130048   ;;  %s37_s8 = smov 16   ;;  %s38_s9 = smov 32   ;;  %vm13_vm1 = vcmask 523648   ;;  %vm19_vm2 = vcmask 392448   ;;  %vm25_vm3 = vcmask 261248   ;;  %s55_s0 = inlined_call_operand.vmem [shape: f32[4,16], index: 0, kind: input, shape index: {}]   ;;  %s56_s1 = inlined_call_operand.vmem [shape: f32[64], index: 1, kind: output, shape index: {}]  }
   0x1   :  { %v4_v0 = vld [vmem:[%s55_s0] sm:$0xf]  ;;  %s36_s0 = smov 48  }
   0x2   :  { %5 = vst [vmem:[#allocation1] sm:$0xf] %v4_v0 }
   0x9   :  { %v10_v1 = vld [vmem:[#allocation1 + $0x3] sm:$0x1]   ;;  %v22_v2 = vld [vmem:[#allocation1 + $0x1] sm:$0x1]   ;;  %v6_v3 = vld [vmem:[#allocation1] sm:$0x1]  }
   0xa   :  { %11 = vrot.lane.b32.xlu0 %v10_v1, %s36_s0  ;;  %23 = vrot.lane.b32.xlu1 %v22_v2, %s37_s8  ;;  %v16_v4 = vld [vmem:[#allocation1 + $0x2] sm:$0x1]   ;;  %8 = vst.msk [vmem:[#allocation0] sm:$0x1] %vm7_vm0, %v6_v3  }
   0xe   :  { %17 = vrot.lane.b32.xlu0 %v16_v4, %s38_s9 }
  0x7c   :  { %v12_v5 = vpop.permute.xlu0 %11   ;;  %v24_v6 = vpop.permute.xlu1 %23  }
  0x7d   :  { %14 = vst.msk [vmem:[#allocation0] sm:$0x1] %vm13_vm1, %v12_v5  }
  0x80   :  { %v18_v7 = vpop.permute.xlu0 %17  }
  0x81   :  { %20 = vst.msk [vmem:[#allocation0] sm:$0x1] %vm19_vm2, %v18_v7  }
  0x82   :  { %26 = vst.msk [vmem:[#allocation0] sm:$0x1] %vm25_vm3, %v24_v6  }
  0x89   :  { %v30_v8 = vld [vmem:[#allocation0] sm:$0x1] }
  0x8a   :  { %32 = vst [vmem:[%s56_s1] sm:$0x1] %v30_v8 }

// kernel: model_forward.18
= control target key start
LH: loop header
LB: loop body
LE: loop exit
PB: predicated region body
PF: predicated region fallthrough
CT: control target
= control target key end

     0   :  { %s966_s0 = inlined_call_operand.vmem [shape: f32[32,128], index: 0, kind: input, shape index: {}]   ;;  %s967_s1 = inlined_call_operand.vmem [shape: f32[128,128], index: 1, kind: input, shape index: {}]   ;;  %s968_s2 = inlined_call_operand.vmem [shape: f32[32,128], index: 2, kind: output, shape index: {0}]   ;;  %s969_s3 = inlined_call_operand.hbm [shape: f32[1,1], index: 3, kind: output, shape index: {1}]  }
   0x1   :  { %v18_v0 = vld [vmem:[%s967_s1] sm:$0xff]  ;;  %v19_v1 = vld [vmem:[%s967_s1 + $0x8] sm:$0xff]  ;;  %v20_v2 = vld [vmem:[%s967_s1 + $0x10] sm:$0xff] }
   0x2   :  { %v691_v3 = vpack.c.bf16 %v19_v1, %v18_v0  ;;  %v21_v4 = vld [vmem:[%s967_s1 + $0x18] sm:$0xff]  ;;  %v48_v5 = vmul.f32 %v20_v2, %v20_v2  ;;  %v46_v6 = vmul.f32 %v18_v0, %v18_v0  ;;  %v47_v9 = vmul.f32 %v19_v1, %v19_v1  ;;  %v820_v10 = vld [vmem:[%s966_s0] sm:$0xff]  ;;  %v23_v12 = vld [vmem:[%s967_s1 + $0x28] sm:$0xff] }
   0x3   :  { %v695_v7 = vpack.c.bf16 %v21_v4, %v20_v2  ;;  %v49_v8 = vmul.f32 %v21_v4, %v21_v4  ;;  %v22_v11 = vld [vmem:[%s967_s1 + $0x20] sm:$0xff]  ;;  %647 = vmatprep.mubr.f32.mxu0 %v820_v10 }
   0x4   :  { %692 = vmatprep.subr.bf16.mxu0 %v691_v3  ;;  %66 = vadd.xlane.f32.xlu1 %v48_v5 }
   0x5   :  { %694 = vmatpush3.bf16.xpose.msra.mxu0 %v691_v3  ;;  %62 = vadd.xlane.f32.xlu0 %v46_v6 }
   0x6   :  { %696 = vmatprep.subr.bf16.mxu0 %v695_v7 }
   0x7   :  { %9 = vsyncpa [#allocation3], 0  ;;  %v51_v13 = vmul.f32 %v23_v12, %v23_v12  ;;  %v50_v14 = vmul.f32 %v22_v11, %v22_v11  ;;  %724 = vmatprep.subr.bf16.mxu1 %v691_v3  ;;  %v699_v15 = vpack.c.bf16 %v23_v12, %v22_v11  ;;  %v25_v16 = vld [vmem:[%s967_s1 + $0x38] sm:$0xff]  ;;  %v24_v17 = vld [vmem:[%s967_s1 + $0x30] sm:$0xff]  ;;  %v34_v43 = vmul.f32 %v820_v10, %v820_v10  ;;  %s784_s6 = smov [#allocation2]  }
   0x8   :  { %68 = vadd.xlane.f32.xlu1 %v49_v8  ;;  %726 = vmatpush3.bf16.msra.mxu1 %v691_v3  ;;  %v53_v18 = vmul.f32 %v25_v16, %v25_v16  ;;  %v52_v19 = vmul.f32 %v24_v17, %v24_v17  ;;  %v27_v20 = vld [vmem:[%s967_s1 + $0x48] sm:$0xff]  ;;  %v26_v21 = vld [vmem:[%s967_s1 + $0x40] sm:$0xff]  ;;  %v703_v23 = vpack.c.bf16 %v25_v16, %v24_v17  ;;  %v29_v25 = vld [vmem:[%s967_s1 + $0x58] sm:$0xff]  ;;  %v195_v48 = vlaneseq  ;;  %s557_s7 = sshll.u32 %s784_s6, 4  ;;  %s558_s7 = int_to_ptr.vmem [resolvable:$true] %s557_s7 }
   0x9   :  { %64 = vadd.xlane.f32.xlu0 %v47_v9  ;;  %728 = vmatprep.subr.bf16.mxu1 %v695_v7  ;;  %v55_v22 = vmul.f32 %v27_v20, %v27_v20  ;;  %v54_v24 = vmul.f32 %v26_v21, %v26_v21  ;;  %v28_v26 = vld [vmem:[%s967_s1 + $0x50] sm:$0xff]  ;;  %v57_v27 = vmul.f32 %v29_v25, %v29_v25  ;;  %v31_v30 = vld [vmem:[%s967_s1 + $0x68] sm:$0xff]  ;;  %v30_v31 = vld [vmem:[%s967_s1 + $0x60] sm:$0xff]  ;;  %vm206_vm0 = vcmask 130112   ;;  %s759_s8 = scalar_lea.vmem %s558_s7, 16  ;;  %s763_s9 = scalar_lea.vmem %s558_s7, 32 }
   0xa   :  { %v707_v28 = vpack.c.bf16 %v27_v20, %v26_v21  ;;  %v56_v29 = vmul.f32 %v28_v26, %v28_v26  ;;  %v59_v32 = vmul.f32 %v31_v30, %v31_v30  ;;  %v711_v33 = vpack.c.bf16 %v29_v25, %v28_v26  ;;  %v33_v35 = vld [vmem:[%s967_s1 + $0x78] sm:$0xff]  ;;  %v32_v36 = vld [vmem:[%s967_s1 + $0x70] sm:$0xff]  ;;  %v862_v40 = vld [vmem:[%s966_s0 + $0x8] sm:$0xff]  ;;  %p760_p0 = scmp.ne.s32.totalorder %s558_s7, %s759_s8  ;;  %p764_p1 = scmp.lt.s32.totalorder %s558_s7, %s558_s7 }
   0xb   :  { %v58_v34 = vmul.f32 %v30_v31, %v30_v31  ;;  %v61_v37 = vmul.f32 %v33_v35, %v33_v35  ;;  %v715_v38 = vpack.c.bf16 %v31_v30, %v30_v31  ;;  %v60_v39 = vmul.f32 %v32_v36, %v32_v36  ;;  %v871_v44 = vld [vmem:[%s966_s0 + $0x18] sm:$0xff]  ;;  %v876_v45 = vld [vmem:[%s966_s0 + $0x10] sm:$0xff]  ;;  %p765_p2 = scmp.lt.s32.totalorder %s763_s9, %s759_s8 }
   0xc   :  { %72 = vadd.xlane.f32.xlu1 %v51_v13  ;;  %730 = vmatpush3.bf16.msra.mxu1 %v695_v7  ;;  %v35_v41 = vmul.f32 %v862_v40, %v862_v40  ;;  %v719_v42 = vpack.c.bf16 %v33_v35, %v32_v36  ;;  %v37_v46 = vmul.f32 %v871_v44, %v871_v44  ;;  %v885_v49 = vand.u32 127, %v195_v48 }
   0xd   :  { %698 = vmatpush3.bf16.xpose.msra.mxu0 %v695_v7  ;;  %70 = vadd.xlane.f32.xlu0 %v50_v14  ;;  %v36_v47 = vmul.f32 %v876_v45, %v876_v45  ;;  %v887_v50 = vshrl.u32 %v195_v48, 7  ;;  %vm213_vm1 = vcmask 195712   ;;  %vm220_vm2 = vcmask 261312   ;;  %p766_p3 = por %p765_p2, %p764_p1 }
   0xe   :  { %700 = vmatprep.subr.bf16.mxu0 %v699_v15  ;;  %732 = vmatprep.subr.bf16.mxu1 %v699_v15  ;;  %v201_v51 = vadd.s32 4294967288, %v885_v49  ;;  %v208_v53 = vadd.s32 4294967280, %v885_v49  ;;  %v215_v57 = vadd.s32 4294967272, %v885_v49  ;;  %v222_v62 = vadd.s32 4294967264, %v885_v49 }
   0xf   :  { %v199_v55 = vsub.s32 %v885_v49, %v887_v50  ;;  %v229_v3 = vadd.s32 4294967256, %v885_v49  ;;  %v236_v7 = vadd.s32 4294967248, %v885_v49  ;;  %vm227_vm3 = vcmask 326912   ;;  %p767_p4 = pnand %p766_p3, %p760_p0 }
  0x10   :  { %76 = vadd.xlane.f32.xlu1 %v53_v18  ;;  %734 = vmatpush3.bf16.msra.mxu1 %v699_v15  ;;  %v204_v56 = vsub.s32 %v201_v51, %v887_v50  ;;  %v211_v58 = vsub.s32 %v208_v53, %v887_v50  ;;  %v218_v63 = vsub.s32 %v215_v57, %v887_v50  ;;  %v243_v14 = vadd.s32 4294967240, %v885_v49 }
  0x11   :  { %74 = vadd.xlane.f32.xlu0 %v52_v19  ;;  %736 = vmatprep.subr.bf16.mxu1 %v703_v23  ;;  %v225_v4 = vsub.s32 %v222_v62, %v887_v50  ;;  %v232_v8 = vsub.s32 %v229_v3, %v887_v50  ;;  %vm234_vm4 = vcmask 392512   ;;  %v250_v18 = vadd.s32 4294967232, %v885_v49 }
  0x12   :  { %v246_v19 = vsub.s32 %v243_v14, %v887_v50  ;;  %vm241_vm5 = vcmask 458112   ;;  %vm248_vm6 = vcmask 523712   ;;  %vm255_vm7 = vcmask 589312  }
  0x13   :  { %v253_v25 = vsub.s32 %v250_v18, %v887_v50  ;;  %vm262_vm8 = vcmask 654912   ;;  %vm269_vm9 = vcmask 720512   ;;  %vm276_vm10 = vcmask 786112  }
  0x14   :  { %80 = vadd.xlane.f32.xlu1 %v55_v22  ;;  %738 = vmatpush3.bf16.msra.mxu1 %v703_v23  ;;  %v292_v53 = vadd.s32 4294967184, %v885_v49  ;;  %vm283_vm11 = vcmask 851712   ;;  %vm290_vm12 = vcmask 917312   ;;  %vm297_vm13 = vcmask 982912  }
  0x15   :  { %702 = vmatpush3.bf16.xpose.msra.mxu0 %v699_v15  ;;  %78 = vadd.xlane.f32.xlu0 %v54_v24  ;;  %v239_v15 = vsub.s32 %v236_v7, %v887_v50  ;;  %v257_v24 = vadd.s32 4294967224, %v885_v49  ;;  %vm304_vm14 = vcmask 1048512   ;;  %vm331_vm15 = vcmp.lt.s32.totalorder %v885_v49, 32 }
  0x16   :  { %704 = vmatprep.subr.bf16.mxu0 %v703_v23  ;;  %740 = vmatprep.subr.bf16.mxu1 %v707_v28 }
  0x18   :  { %84 = vadd.xlane.f32.xlu1 %v57_v27  ;;  %742 = vmatpush3.bf16.msra.mxu1 %v707_v28 }
  0x19   :  { %82 = vadd.xlane.f32.xlu0 %v56_v29  ;;  %744 = vmatprep.subr.bf16.mxu1 %v711_v33  ;;  %v260_v29 = vsub.s32 %v257_v24, %v887_v50 }
  0x1c   :  { %88 = vadd.xlane.f32.xlu1 %v59_v32  ;;  %746 = vmatpush3.bf16.msra.mxu1 %v711_v33 }
  0x1d   :  { %706 = vmatpush3.bf16.xpose.msra.mxu0 %v703_v23  ;;  %86 = vadd.xlane.f32.xlu0 %v58_v34  ;;  %v271_v34 = vadd.s32 4294967208, %v885_v49 }
  0x1e   :  { %708 = vmatprep.subr.bf16.mxu0 %v707_v28  ;;  %748 = vmatprep.subr.bf16.mxu1 %v715_v38 }
  0x20   :  { %92 = vadd.xlane.f32.xlu1 %v61_v37  ;;  %750 = vmatpush3.bf16.msra.mxu1 %v715_v38 }
  0x21   :  { %90 = vadd.xlane.f32.xlu0 %v60_v39  ;;  %752 = vmatprep.subr.bf16.mxu1 %v719_v42  ;;  %v274_v39 = vsub.s32 %v271_v34, %v887_v50 }
  0x24   :  { %40 = vadd.xlane.f32.xlu1 %v35_v41  ;;  %754 = vmatpush3.bf16.msra.mxu1 %v719_v42 }
  0x25   :  { %710 = vmatpush3.bf16.xpose.msra.mxu0 %v707_v28  ;;  %38 = vadd.xlane.f32.xlu0 %v34_v43  ;;  %v264_v28 = vadd.s32 4294967216, %v885_v49 }
  0x26   :  { %712 = vmatprep.subr.bf16.mxu0 %v711_v33 }
  0x27   :  { %v267_v35 = vsub.s32 %v264_v28, %v887_v50 }
  0x28   :  { %44 = vadd.xlane.f32.xlu1 %v37_v46 }
  0x29   :  { %42 = vadd.xlane.f32.xlu0 %v36_v47  ;;  %v285_v47 = vadd.s32 4294967192, %v885_v49 }
  0x2d   :  { %714 = vmatpush3.bf16.xpose.msra.mxu0 %v711_v33 }
  0x2e   :  { %716 = vmatprep.subr.bf16.mxu0 %v715_v38 }
  0x35   :  { %718 = vmatpush3.bf16.xpose.msra.mxu0 %v715_v38  ;;  %v278_v38 = vadd.s32 4294967200, %v885_v49 }
  0x36   :  { %720 = vmatprep.subr.bf16.mxu0 %v719_v42 }
  0x37   :  { %v281_v48 = vsub.s32 %v278_v38, %v887_v50 }
  0x3d   :  { %722 = vmatpush3.bf16.xpose.msra.mxu0 %v719_v42 }
  0x44   :  { %648 = vmatmul.mubr.f32.vlgmr.msra.gmra.mrb[0].mxu0 %v862_v40 }
  0x45   :  { %650 = vmatprep.mubr.f32.mxu0 %v876_v45 }
  0x48   :  { %651 = vmatmul.mubr.f32.gmra.mrb[2].mxu0 %v871_v44 }
  0x91   :  { %v67_v54 = vpop.xlane.xlu1 %66 }
  0x92   :  { %v63_v52 = vpop.xlane.xlu0 %62  ;;  %v212_v1 = vrot.slane %v67_v54, %v211_v58  ;;  %v288_v54 = vsub.s32 %v285_v47, %v887_v50 }
  0x93   :  { %v200_v60 = vrot.slane %v63_v52, %v199_v55 }
  0x95   :  { %v69_v0 = vpop.xlane.xlu1 %68 }
  0x96   :  { %v65_v59 = vpop.xlane.xlu0 %64  ;;  %v219_v5 = vrot.slane %v69_v0, %v218_v63 }
  0x97   :  { %v205_v61 = vrot.slane %v65_v59, %v204_v56  ;;  %v299_v59 = vadd.s32 4294967176, %v885_v49 }
  0x99   :  { %v207_v2 = vsel %vm206_vm0, %v205_v61, %v200_v60  ;;  %v73_v9 = vpop.xlane.xlu1 %72  ;;  %v295_v60 = vsub.s32 %v292_v53, %v887_v50  ;;  %v302_v63 = vsub.s32 %v299_v59, %v887_v50 }
  0x9a   :  { %v214_v6 = vsel %vm213_vm1, %v212_v1, %v207_v2  ;;  %v71_v11 = vpop.xlane.xlu0 %70  ;;  %v233_v16 = vrot.slane %v73_v9, %v232_v8 }
  0x9b   :  { %v226_v12 = vrot.slane %v71_v11, %v225_v4  ;;  %v221_v13 = vsel %vm220_vm2, %v219_v5, %v214_v6 }
  0x9d   :  { %v228_v17 = vsel %vm227_vm3, %v226_v12, %v221_v13  ;;  %v77_v20 = vpop.xlane.xlu1 %76 }
  0x9e   :  { %v75_v21 = vpop.xlane.xlu0 %74  ;;  %v235_v23 = vsel %vm234_vm4, %v233_v16, %v228_v17  ;;  %v247_v26 = vrot.slane %v77_v20, %v246_v19 }
  0x9f   :  { %v240_v22 = vrot.slane %v75_v21, %v239_v15 }
  0xa1   :  { %v242_v27 = vsel %vm241_vm5, %v240_v22, %v235_v23  ;;  %v81_v30 = vpop.xlane.xlu1 %80 }
  0xa2   :  { %v79_v31 = vpop.xlane.xlu0 %78  ;;  %v249_v33 = vsel %vm248_vm6, %v247_v26, %v242_v27  ;;  %v261_v36 = vrot.slane %v81_v30, %v260_v29 }
  0xa3   :  { %v254_v32 = vrot.slane %v79_v31, %v253_v25 }
  0xa5   :  { %v256_v37 = vsel %vm255_vm7, %v254_v32, %v249_v33  ;;  %v85_v41 = vpop.xlane.xlu1 %84 }
  0xa6   :  { %v83_v42 = vpop.xlane.xlu0 %82  ;;  %v263_v46 = vsel %vm262_vm8, %v261_v36, %v256_v37  ;;  %v275_v51 = vrot.slane %v85_v41, %v274_v39 }
  0xa7   :  { %v268_v43 = vrot.slane %v83_v42, %v267_v35 }
  0xa9   :  { %v270_v52 = vsel %vm269_vm9, %v268_v43, %v263_v46  ;;  %v89_v55 = vpop.xlane.xlu1 %88 }
  0xaa   :  { %v87_v56 = vpop.xlane.xlu0 %86  ;;  %v277_v58 = vsel %vm276_vm10, %v275_v51, %v270_v52  ;;  %v289_v61 = vrot.slane %v89_v55, %v288_v54 }
  0xab   :  { %v282_v57 = vrot.slane %v87_v56, %v281_v48 }
  0xad   :  { %v284_v62 = vsel %vm283_vm11, %v282_v57, %v277_v58  ;;  %v93_v0 = vpop.xlane.xlu1 %92 }
  0xae   :  { %v91_v1 = vpop.xlane.xlu0 %90  ;;  %v291_v3 = vsel %vm290_vm12, %v289_v61, %v284_v62  ;;  %v303_v4 = vrot.slane %v93_v0, %v302_v63  ;;  %vm547_vm12 = vcmask 0  }
  0xaf   :  { %v296_v2 = vrot.slane %v91_v1, %v295_v60 }
  0xb1   :  { %v298_v5 = vsel %vm297_vm13, %v296_v2, %v291_v3  ;;  %v41_v6 = vpop.xlane.xlu1 %40 }
  0xb2   :  { %v39_v7 = vpop.xlane.xlu0 %38  ;;  %v305_v8 = vsel %vm304_vm14, %v303_v4, %v298_v5 }
  0xb3   :  { %v320_v11 = vadd.f32 %v305_v8, %v41_v6  ;;  %v319_v14 = vadd.f32 %v305_v8, %v39_v7 }
  0xb5   :  { %v45_v15 = vpop.xlane.xlu1 %44 }
  0xb6   :  { %v43_v50 = vpop.xlane.xlu0 %42  ;;  %v322_v20 = vadd.f32 %v305_v8, %v45_v15 }
  0xb7   :  { %v321_v24 = vadd.f32 %v305_v8, %v43_v50 }
 0x117   :  { %v649_v9 = vpop.f32.mrb[0].mxu0 }
 0x118   :  { %v324_v12 = vmul.f32 2.0, %v649_v9  ;;  %v160_v13 = vpop.f32.mrb[1].mxu0 }
 0x119   :  { %v323_v16 = vmul.f32 2.0, %v160_v13 }
 0x11a   :  { %v328_v17 = vsub.f32 %v320_v11, %v324_v12 }
 0x11b   :  { %v652_v18 = vpop.f32.mrb[2].mxu0  ;;  %v327_v19 = vsub.f32 %v319_v14, %v323_v16 }
 0x11c   :  { %v326_v21 = vmul.f32 2.0, %v652_v18  ;;  %v170_v22 = vpop.f32.mrb[3].mxu0  ;;  %v333_v23 = vsel %vm331_vm15, %v328_v17, 1e+30 }
 0x11d   :  { %v325_v25 = vmul.f32 2.0, %v170_v22  ;;  %338 = vmin.xlane.f32.xlu1 %v333_v23  ;;  %v332_v26 = vsel %vm331_vm15, %v327_v19, 1e+30 }
 0x11e   :  { %336 = vmin.xlane.f32.xlu0 %v332_v26  ;;  %v330_v27 = vsub.f32 %v322_v20, %v326_v21 }
 0x11f   :  { %v329_v28 = vsub.f32 %v321_v24, %v325_v25 }
 0x120   :  { %v335_v29 = vsel %vm331_vm15, %v330_v27, 1e+30 }
 0x121   :  { %342 = vmin.xlane.f32.xlu1 %v335_v29  ;;  %v334_v30 = vsel %vm331_vm15, %v329_v28, 1e+30 }
 0x122   :  { %340 = vmin.xlane.f32.xlu0 %v334_v30 }
 0x1aa   :  { %v339_v31 = vpop.xlane.xlu1 %338 }
 0x1ab   :  { %vm345_vm0 = vcmp.eq.f32.partialorder %v333_v23, %v339_v31  ;;  %v337_v32 = vpop.xlane.xlu0 %336  ;;  %v783_v23 = vmov 1.0  }
 0x1ac   :  { %v349_v33 = vsel %vm345_vm0, %v885_v49, 128  ;;  %vm344_vm1 = vcmp.eq.f32.partialorder %v332_v26, %v337_v32 }
 0x1ad   :  { %v348_v34 = vsel %vm344_vm1, %v885_v49, 128  ;;  %v367_v35 = vshra.s32 %v349_v33, 16  ;;  %v366_v52 = vand.u32 65535, %v349_v33 }
 0x1ae   :  { %v343_v36 = vpop.xlane.xlu1 %342  ;;  %v353_v37 = vshra.s32 %v348_v34, 16  ;;  %v352_v53 = vand.u32 65535, %v348_v34 }
 0x1af   :  { %vm347_vm2 = vcmp.eq.f32.partialorder %v335_v29, %v343_v36  ;;  %v341_v38 = vpop.xlane.xlu0 %340  ;;  %v369_v39 = vcvt.s32.f32 %v367_v35  ;;  %v368_v56 = vcvt.s32.f32 %v366_v52 }
 0x1b0   :  { %v351_v41 = vsel %vm347_vm2, %v885_v49, 128  ;;  %vm346_vm3 = vcmp.eq.f32.partialorder %v334_v30, %v341_v38  ;;  %v355_v42 = vcvt.s32.f32 %v353_v37  ;;  %v354_v59 = vcvt.s32.f32 %v352_v53 }
 0x1b1   :  { %v350_v43 = vsel %vm346_vm3, %v885_v49, 128  ;;  %370 = vmin.xlane.f32.xlu1 %v369_v39  ;;  %v395_v46 = vshra.s32 %v351_v41, 16  ;;  %v394_v54 = vand.u32 65535, %v351_v41 }
 0x1b2   :  { %356 = vmin.xlane.f32.xlu0 %v355_v42  ;;  %v381_v47 = vshra.s32 %v350_v43, 16  ;;  %v380_v57 = vand.u32 65535, %v350_v43 }
 0x1b3   :  { %v397_v48 = vcvt.s32.f32 %v395_v46  ;;  %v396_v63 = vcvt.s32.f32 %v394_v54 }
 0x1b4   :  { %v383_v51 = vcvt.s32.f32 %v381_v47  ;;  %v382_v1 = vcvt.s32.f32 %v380_v57 }
 0x1b5   :  { %398 = vmin.xlane.f32.xlu1 %v397_v48 }
 0x1b6   :  { %384 = vmin.xlane.f32.xlu0 %v383_v51 }
 0x23e   :  { %v371_v55 = vpop.xlane.xlu1 %370 }
 0x23f   :  { %v357_v58 = vpop.xlane.xlu0 %356  ;;  %vm372_vm4 = vcmp.eq.f32.partialorder %v369_v39, %v371_v55  ;;  %v377_v4 = vcvt.f32.s32 %v371_v55 }
 0x240   :  { %v373_v60 = vsel %vm372_vm4, %v368_v56, inf  ;;  %vm358_vm5 = vcmp.eq.f32.partialorder %v355_v42, %v357_v58  ;;  %v363_v5 = vcvt.f32.s32 %v357_v58 }
 0x241   :  { %374 = vmin.xlane.f32.xlu1 %v373_v60  ;;  %v359_v61 = vsel %vm358_vm5, %v354_v59, inf  ;;  %v378_v7 = vshll.u32 %v377_v4, 16 }
 0x242   :  { %v399_v62 = vpop.xlane.xlu1 %398  ;;  %360 = vmin.xlane.f32.xlu0 %v359_v61  ;;  %v364_v12 = vshll.u32 %v363_v5, 16 }
 0x243   :  { %v385_v0 = vpop.xlane.xlu0 %384  ;;  %vm400_vm6 = vcmp.eq.f32.partialorder %v397_v48, %v399_v62  ;;  %v405_v8 = vcvt.f32.s32 %v399_v62 }
 0x244   :  { %v401_v2 = vsel %vm400_vm6, %v396_v63, inf  ;;  %vm386_vm7 = vcmp.eq.f32.partialorder %v383_v51, %v385_v0  ;;  %v391_v13 = vcvt.f32.s32 %v385_v0 }
 0x245   :  { %402 = vmin.xlane.f32.xlu1 %v401_v2  ;;  %v387_v3 = vsel %vm386_vm7, %v382_v1, inf  ;;  %v406_v17 = vshll.u32 %v405_v8, 16 }
 0x246   :  { %388 = vmin.xlane.f32.xlu0 %v387_v3  ;;  %v392_v20 = vshll.u32 %v391_v13, 16 }
 0x2ce   :  { %v375_v6 = vpop.xlane.xlu1 %374 }
 0x2cf   :  { %v376_v9 = vcvt.f32.s32 %v375_v6  ;;  %v361_v11 = vpop.xlane.xlu0 %360 }
 0x2d0   :  { %v362_v14 = vcvt.f32.s32 %v361_v11 }
 0x2d1   :  { %v379_v15 = vadd.s32 %v378_v7, %v376_v9 }
 0x2d2   :  { %v403_v16 = vpop.xlane.xlu1 %402  ;;  %v365_v50 = vadd.s32 %v364_v12, %v362_v14 }
 0x2d3   :  { %v404_v18 = vcvt.f32.s32 %v403_v16  ;;  %v389_v19 = vpop.xlane.xlu0 %388  ;;  %vm409_vm9 = vcmp.eq.s32.totalorder %v885_v49, %v379_v15 }
 0x2d4   :  { %v390_v21 = vcvt.f32.s32 %v389_v19  ;;  %vm408_vm8 = vcmp.eq.s32.totalorder %v885_v49, %v365_v50 }
 0x2d5   :  { %v407_v22 = vadd.s32 %v406_v17, %v404_v18  ;;  %685 = vmatprep.mubr.msk.f32.mxu1 %vm408_vm8, %v783_v23 }
 0x2d6   :  { %v393_v24 = vadd.s32 %v392_v20, %v390_v21  ;;  %686 = vmatmul.mubr.msk.f32.vlgmr.msra.gmra.mrb[0].mxu1 %vm409_vm9, %v783_v23 }
 0x2d7   :  { %vm411_vm11 = vcmp.eq.s32.totalorder %v885_v49, %v407_v22 }
 0x2d8   :  { %vm410_vm10 = vcmp.eq.s32.totalorder %v885_v49, %v393_v24 }
 0x2d9   :  { %688 = vmatprep.mubr.msk.f32.mxu1 %vm410_vm10, %v783_v23 }
 0x2da   :  { %689 = vmatmul.mubr.msk.f32.gmra.mrb[2].mxu1 %vm411_vm11, %v783_v23 }
 0x3a9   :  { %v687_v25 = vpop.f32.mrb[0].mxu1 }
 0x3aa   :  { %506 = vst [vmem:[%s968_s2 + $0x8] sm:$0xff] %v687_v25  ;;  %v519_v26 = vsub.f32 %v687_v25, %v862_v40  ;;  %v486_v27 = vpop.f32.mrb[1].mxu1 }
 0x3ab   :  { %505 = vst [vmem:[%s968_s2] sm:$0xff] %v486_v27  ;;  %v518_v28 = vsub.f32 %v486_v27, %v820_v10 }
 0x3ac   :  { %v527_v29 = vmul.f32 %v519_v26, %v519_v26 }
 0x3ad   :  { %v526_v30 = vmul.f32 %v518_v28, %v518_v28  ;;  %v690_v31 = vpop.f32.mrb[2].mxu1 }
 0x3ae   :  { %508 = vst [vmem:[%s968_s2 + $0x18] sm:$0xff] %v690_v31  ;;  %v496_v49 = vpop.f32.mrb[3].mxu1  ;;  %v521_v33 = vsub.f32 %v690_v31, %v871_v44 }
 0x3af   :  { %v530_v32 = vadd.f32 %v527_v29, %v526_v30  ;;  %507 = vst [vmem:[%s968_s2 + $0x10] sm:$0xff] %v496_v49  ;;  %v520_v40 = vsub.f32 %v496_v49, %v876_v45 }
 0x3b0   :  { %v529_v35 = vmul.f32 %v521_v33, %v521_v33 }
 0x3b1   :  { %v528_v34 = vmul.f32 %v520_v40, %v520_v40 }
 0x3b3   :  { %v531_v10 = vadd.f32 %v530_v32, %v528_v34 }
 0x3b5   :  { %v532_v36 = vadd.f32 %v531_v10, %v529_v35 }
 0x3b7   :  { %533 = vadd.xlane.f32.xlu0 %v532_v36 }
 0x444   :  { %v534_v37 = vpop.xlane.xlu0 %533 }
 0x445   :  { %v535_v38 = vrot.slane %v534_v37, 4 }
 0x447   :  { %v536_v39 = vadd.f32 %v535_v38, %v534_v37 }
 0x449   :  { %v537_v41 = vrot.slane %v536_v39, 2 }
 0x44b   :  { %v538_v42 = vadd.f32 %v537_v41, %v536_v39 }
 0x44d   :  { %v539_v43 = vrot.slane %v538_v42, 1 }
 0x44f   :  { %v540_v46 = vadd.f32 %v539_v43, %v538_v42 }
 0x451   :  { %755 = vpush %v540_v46 }
 0x482   :  { %s756_s4 = spop %755 }
 0x483   :  { %s544_s5 = smul.f32 0.001953125, %s756_s4 }
 0x485   :  { %s545_s2 = smul.f32 1.25, %s544_s5 }
 0x487   :  { %v546_v44 = vstv %s545_s2 }
 0x488   :  { %548 = vst.msk [vmem:[#allocation2] sm:$0x1] %vm547_vm12, %v546_v44 }
 0x489   :  { %770 = shalt.err (!%p767_p4)
}
 0x48a   :  { %s771_s12 = scalar_lea.hbm %s969_s3, 16 }
 0x48b   :  { %p772_p5 = scmp.ne.s32.totalorder %s969_s3, %s771_s12  ;;  %p775_p6 = scmp.lt.u32.totalorder %s771_s12, %s969_s3 }
 0x48d   :  { %p777_p7 = pnand %p775_p6, %p772_p5 }
 0x48f   :  { %780 = shalt.err (!%p777_p7)
}
 0x490   :  { %560 = dma.vmem_to_hbm [thread:$0]  %s558_s7, 16, %s969_s3, [#allocation3]  }
 0x491   :  { %781 = dma.done.wait [#allocation3], 16  }
 0x492   :  { %782 = vsyncadd [#allocation3], 4294967280 }
 0x493   :  { %566 = vsyncpa [#allocation3], 1 }

// kernel: model_forward.22
= control target key start
LH: loop header
LB: loop body
LE: loop exit
PB: predicated region body
PF: predicated region fallthrough
CT: control target
= control target key end

     0   :  { %s354_s1 = inlined_call_operand.vmem [shape: bf16[128,128], index: 1, kind: input, shape index: {}]   ;;  %s355_s0 = inlined_call_operand.vmem [shape: bf16[56,128], index: 0, kind: input, shape index: {}]   ;;  %s356_s2 = inlined_call_operand.vmem [shape: f32[1,128], index: 2, kind: input, shape index: {}]   ;;  %s357_s3 = inlined_call_operand.vmem [shape: f32[56,128], index: 3, kind: output, shape index: {}]  }
   0x1   :  { %v262_v0 = vld [vmem:[%s354_s1] sm:$0xff]   ;;  %v263_v1 = vld [vmem:[%s354_s1 + $0x8] sm:$0xff]   ;;  %v264_v2 = vld [vmem:[%s354_s1 + $0x10] sm:$0xff]  }
   0x2   :  { %222 = vmatprep.subr.bf16.mxu0 %v262_v0  ;;  %246 = vmatprep.subr.bf16.mxu1 %v262_v0  ;;  %v265_v3 = vld [vmem:[%s354_s1 + $0x18] sm:$0xff]   ;;  %v270_v4 = vld [vmem:[%s355_s0] sm:$0xff]   ;;  %v271_v5 = vld [vmem:[%s355_s0 + $0x10] sm:$0xff]  }
   0x3   :  { %223 = vmatpush3.bf16.msra.mxu0 %v262_v0  ;;  %254 = vmatpush3.bf16.msra.mxu1 %v262_v0  ;;  %v266_v6 = vld [vmem:[%s354_s1 + $0x20] sm:$0xff]   ;;  %v267_v7 = vld [vmem:[%s354_s1 + $0x28] sm:$0xff]   ;;  %v268_v8 = vld [vmem:[%s354_s1 + $0x30] sm:$0xff]  }
   0x4   :  { %224 = vmatprep.subr.bf16.mxu0 %v263_v1  ;;  %247 = vmatprep.subr.bf16.mxu1 %v263_v1  ;;  %v269_v9 = vld [vmem:[%s354_s1 + $0x38] sm:$0xff]   ;;  %v272_v10 = vld [vmem:[%s355_s0 + $0x8] sm:$0xff]   ;;  %v197_v12 = vld [vmem:[%s356_s2] ss:$0 sm:$0xff] }
   0x5   :  { %238 = vmatprep.mubr.bf16.mxu0 %v270_v4  ;;  %242 = vmatprep.mubr.bf16.mxu1 %v271_v5  ;;  %v273_v11 = vld [vmem:[%s355_s0 + $0x18] ss:$0 sps:$4 sm:$0xff]  }
   0x7   :  { %225 = vmatpush3.bf16.msra.mxu0 %v263_v1  ;;  %255 = vmatpush3.bf16.msra.mxu1 %v263_v1 }
   0x8   :  { %226 = vmatprep.subr.bf16.mxu0 %v264_v2  ;;  %248 = vmatprep.subr.bf16.mxu1 %v264_v2 }
   0xb   :  { %227 = vmatpush3.bf16.msra.mxu0 %v264_v2  ;;  %256 = vmatpush3.bf16.msra.mxu1 %v264_v2 }
   0xc   :  { %228 = vmatprep.subr.bf16.mxu0 %v265_v3  ;;  %249 = vmatprep.subr.bf16.mxu1 %v265_v3 }
   0xf   :  { %229 = vmatpush3.bf16.msra.mxu0 %v265_v3  ;;  %257 = vmatpush3.bf16.msra.mxu1 %v265_v3 }
  0x10   :  { %230 = vmatprep.subr.bf16.mxu0 %v266_v6  ;;  %250 = vmatprep.subr.bf16.mxu1 %v266_v6 }
  0x13   :  { %231 = vmatpush3.bf16.msra.mxu0 %v266_v6  ;;  %258 = vmatpush3.bf16.msra.mxu1 %v266_v6 }
  0x14   :  { %232 = vmatprep.subr.bf16.mxu0 %v267_v7  ;;  %251 = vmatprep.subr.bf16.mxu1 %v267_v7 }
  0x17   :  { %233 = vmatpush3.bf16.msra.mxu0 %v267_v7  ;;  %259 = vmatpush3.bf16.msra.mxu1 %v267_v7 }
  0x18   :  { %234 = vmatprep.subr.bf16.mxu0 %v268_v8  ;;  %252 = vmatprep.subr.bf16.mxu1 %v268_v8 }
  0x1b   :  { %235 = vmatpush3.bf16.msra.mxu0 %v268_v8  ;;  %260 = vmatpush3.bf16.msra.mxu1 %v268_v8 }
  0x1c   :  { %236 = vmatprep.subr.bf16.mxu0 %v269_v9  ;;  %253 = vmatprep.subr.bf16.mxu1 %v269_v9 }
  0x1f   :  { %237 = vmatpush3.bf16.msra.mxu0 %v269_v9  ;;  %261 = vmatpush3.bf16.msra.mxu1 %v269_v9 }
  0x22   :  { %239 = vmatmul.mubr.bf16.vlgmr.msra.gmra.mrb[0].mxu0 %v272_v10  ;;  %243 = vmatmul.mubr.bf16.vlgmr.msra.gmra.mrb[0].mxu1 %v273_v11 }
  0xf5   :  { %v240_v13 = vpop.f32.mrb[0].mxu0  ;;  %v244_v14 = vpop.f32.mrb[0].mxu1 }
  0xf6   :  { %v158_v15 = vadd.f32 %v240_v13, %v197_v12  ;;  %v174_v16 = vadd.f32 %v244_v14, %v197_v12  ;;  %v149_v17 = vpop.f32.mrb[1].mxu0  ;;  %v165_v18 = vpop.f32.mrb[1].mxu1 }
  0xf7   :  { %v150_v19 = vadd.f32 %v197_v12, %v149_v17  ;;  %v166_v20 = vadd.f32 %v197_v12, %v165_v18  ;;  %v241_v21 = vpop.f32.mrb[2].mxu0  ;;  %v245_v22 = vpop.f32.mrb[2].mxu1 }
  0xf8   :  { %v181_v23 = vmax.f32 %v158_v15, 0.0  ;;  %v185_v24 = vmax.f32 %v174_v16, 0.0  ;;  %v161_v25 = vadd.f32 %v241_v21, %v197_v12  ;;  %v152_v26 = vpop.f32.mrb[3].mxu0  ;;  %v168_v27 = vpop.f32.mrb[3].mxu1 }
  0xf9   :  { %v179_v28 = vmax.f32 %v150_v19, 0.0  ;;  %v183_v29 = vmax.f32 %v166_v20, 0.0  ;;  %v153_v30 = vadd.f32 %v197_v12, %v152_v26  ;;  %v169_v31 = vadd.f32 %v197_v12, %v168_v27 }
  0xfa   :  { %188 = vst [vmem:[%s357_s3 + $0x10] sm:$0xff] %v181_v23  ;;  %192 = vst [vmem:[%s357_s3 + $0x30] sm:$0xff] %v185_v24  ;;  %v182_v32 = vmax.f32 %v161_v25, 0.0 }
  0xfb   :  { %186 = vst [vmem:[%s357_s3] sm:$0xff] %v179_v28  ;;  %190 = vst [vmem:[%s357_s3 + $0x20] sm:$0xff] %v183_v29  ;;  %v180_v33 = vmax.f32 %v153_v30, 0.0  ;;  %v184_v34 = vmax.f32 %v169_v31, 0.0 }
  0xfc   :  { %189 = vst [vmem:[%s357_s3 + $0x18] sm:$0xff] %v182_v32 }
  0xfd   :  { %187 = vst [vmem:[%s357_s3 + $0x8] sm:$0xff] %v180_v33  ;;  %191 = vst [vmem:[%s357_s3 + $0x28] sm:$0xff] %v184_v34 }

// kernel: tile.18
= control target key start
LH: loop header
LB: loop body
LE: loop exit
PB: predicated region body
PF: predicated region fallthrough
CT: control target
= control target key end

     0   :  { %s22_s0 = inlined_call_operand.vmem [shape: f32[3], index: 0, kind: input, shape index: {}]   ;;  %s23_s1 = inlined_call_operand.vmem [shape: f32[4,3], index: 1, kind: output, shape index: {}]  }
   0x1   :  { %v4_v0 = vld [vmem:[%s22_s0] ss:$0 sm:$0xff] }
   0x2   :  { %5 = vst [vmem:[%s23_s1] sm:$0xf] %v4_v0 }

// kernel: tile.19
= control target key start
LH: loop header
LB: loop body
LE: loop exit
PB: predicated region body
PF: predicated region fallthrough
CT: control target
= control target key end

     0   :  { %vm7_vm0 = vcmask 23552   ;;  %s37_s8 = smov 3   ;;  %s38_s9 = smov 6   ;;  %vm13_vm1 = vcmask 97352   ;;  %vm19_vm2 = vcmask 72752   ;;  %vm25_vm3 = vcmask 48152   ;;  %s55_s0 = inlined_call_operand.vmem [shape: f32[4,3], index: 0, kind: input, shape index: {}]   ;;  %s56_s1 = inlined_call_operand.vmem [shape: f32[12], index: 1, kind: output, shape index: {}]  }
   0x1   :  { %v4_v0 = vld [vmem:[%s55_s0] sm:$0xf]  ;;  %s36_s0 = smov 9  }
   0x2   :  { %5 = vst [vmem:[#allocation1] sm:$0xf] %v4_v0 }
   0x9   :  { %v10_v1 = vld [vmem:[#allocation1 + $0x3] sm:$0x1]   ;;  %v22_v2 = vld [vmem:[#allocation1 + $0x1] sm:$0x1]   ;;  %v6_v3 = vld [vmem:[#allocation1] sm:$0x1]  }
   0xa   :  { %11 = vrot.lane.b32.xlu0 %v10_v1, %s36_s0  ;;  %23 = vrot.lane.b32.xlu1 %v22_v2, %s37_s8  ;;  %v16_v4 = vld [vmem:[#allocation1 + $0x2] sm:$0x1]   ;;  %8 = vst.msk [vmem:[#allocation0] sm:$0x1] %vm7_vm0, %v6_v3  }
   0xe   :  { %17 = vrot.lane.b32.xlu0 %v16_v4, %s38_s9 }
  0x7c   :  { %v12_v5 = vpop.permute.xlu0 %11   ;;  %v24_v6 = vpop.permute.xlu1 %23  }
  0x7d   :  { %14 = vst.msk [vmem:[#allocation0] sm:$0x1] %vm13_vm1, %v12_v5  }
  0x80   :  { %v18_v7 = vpop.permute.xlu0 %17  }
  0x81   :  { %20 = vst.msk [vmem:[#allocation0] sm:$0x1] %vm19_vm2, %v18_v7  }
  0x82   :  { %26 = vst.msk [vmem:[#allocation0] sm:$0x1] %vm25_vm3, %v24_v6  }
  0x89   :  { %v30_v8 = vld [vmem:[#allocation0] sm:$0x1] }
  0x8a   :  { %32 = vst [vmem:[%s56_s1] sm:$0x1] %v30_v8 }

// kernel: model_forward.23
= control target key start
LH: loop header
LB: loop body
LE: loop exit
PB: predicated region body
PF: predicated region fallthrough
CT: control target
= control target key end

     0   :  { %v426_v0 = vmov 0.0   ;;  %vm427_vm0 = vmmov 0   ;;  %vm128_vm1 = vcmask 523264   ;;  %s604_s1 = inlined_call_operand.vmem [shape: bf16[64,128], index: 1, kind: input, shape index: {}]   ;;  %s605_s0 = inlined_call_operand.vmem [shape: bf16[168,64], index: 0, kind: input, shape index: {}]   ;;  %s606_s2 = inlined_call_operand.vmem [shape: f32[1,128], index: 2, kind: input, shape index: {}]   ;;  %s607_s3 = inlined_call_operand.vmem [shape: f32[168,128], index: 3, kind: output, shape index: {}]  }
   0x1   :  { %349 = vmatprep.subr.bf16.mxu0 %v426_v0  ;;  %v411_v1 = vld [vmem:[%s604_s1] sm:$0xff]   ;;  %401 = vmatprep.subr.bf16.mxu1 %v426_v0  ;;  %v412_v2 = vld [vmem:[%s604_s1 + $0x8] sm:$0xff]   ;;  %v413_v3 = vld [vmem:[%s604_s1 + $0x10] sm:$0xff]  }
   0x2   :  { %357 = vmatprep.mubr.msk.bf16.mxu0 %vm427_vm0, %v426_v0  ;;  %381 = vmatprep.mubr.msk.bf16.mxu1 %vm427_vm0, %v426_v0  ;;  %v414_v4 = vld [vmem:[%s604_s1 + $0x18] sm:$0xff]   ;;  %v415_v5 = vld [vmem:[%s605_s0] sm:$0xff]   ;;  %v416_v6 = vld [vmem:[%s605_s0 + $0x30] sm:$0xff]  }
   0x3   :  { %350 = vmatpush3.bf16.msra.mxu0 %v411_v1  ;;  %405 = vmatpush3.bf16.msra.mxu1 %v411_v1  ;;  %v417_v7 = vld [vmem:[%s605_s0 + $0x8] sm:$0xff]   ;;  %v418_v8 = vld [vmem:[%s605_s0 + $0x38] sm:$0xff]   ;;  %v419_v9 = vld [vmem:[%s605_s0 + $0x10] sm:$0xff]  }
   0x4   :  { %351 = vmatprep.subr.bf16.mxu0 %v426_v0  ;;  %402 = vmatprep.subr.bf16.mxu1 %v426_v0  ;;  %v420_v10 = vld [vmem:[%s605_s0 + $0x40] sm:$0xff]   ;;  %v421_v11 = vld [vmem:[%s605_s0 + $0x18] sm:$0xff]   ;;  %v422_v12 = vld [vmem:[%s605_s0 + $0x48] sm:$0xff]  }
   0x5   :  { %v423_v13 = vld [vmem:[%s605_s0 + $0x20] sm:$0xff]   ;;  %v424_v14 = vld [vmem:[%s605_s0 + $0x50] ss:$0 sps:$4 sm:$0xff]   ;;  %v425_v15 = vld [vmem:[%s605_s0 + $0x28] sm:$0xff]  }
   0x6   :  { %v518_v16 = vld [vmem:[%s606_s2] ss:$0 sm:$0xff] }
   0x7   :  { %352 = vmatpush3.bf16.msra.mxu0 %v412_v2  ;;  %406 = vmatpush3.bf16.msra.mxu1 %v412_v2 }
   0x8   :  { %353 = vmatprep.subr.bf16.mxu0 %v426_v0  ;;  %403 = vmatprep.subr.bf16.mxu1 %v426_v0 }
   0xb   :  { %354 = vmatpush3.bf16.msra.mxu0 %v413_v3  ;;  %407 = vmatpush3.bf16.msra.mxu1 %v413_v3 }
   0xc   :  { %355 = vmatprep.subr.bf16.mxu0 %v426_v0  ;;  %404 = vmatprep.subr.bf16.mxu1 %v426_v0 }
   0xf   :  { %356 = vmatpush3.bf16.msra.mxu0 %v414_v4  ;;  %408 = vmatpush3.bf16.msra.mxu1 %v414_v4 }
  0x12   :  { %358 = vmatmul.mubr.msk.bf16.vlgmr.msra.gmra.mrb[0].mxu0 %vm128_vm1, %v415_v5  ;;  %382 = vmatmul.mubr.msk.bf16.vlgmr.msra.gmra.mrb[0].mxu1 %vm128_vm1, %v416_v6 }
  0x13   :  { %361 = vmatprep.mubr.msk.bf16.mxu0 %vm427_vm0, %v426_v0  ;;  %385 = vmatprep.mubr.msk.bf16.mxu1 %vm427_vm0, %v426_v0 }
  0x1a   :  { %362 = vmatmul.mubr.msk.bf16.gmra.mrb[4].mxu0 %vm128_vm1, %v417_v7  ;;  %386 = vmatmul.mubr.msk.bf16.gmra.mrb[4].mxu1 %vm128_vm1, %v418_v8 }
  0x1b   :  { %365 = vmatprep.mubr.msk.bf16.mxu0 %vm427_vm0, %v426_v0  ;;  %389 = vmatprep.mubr.msk.bf16.mxu1 %vm427_vm0, %v426_v0 }
  0x22   :  { %366 = vmatmul.mubr.msk.bf16.gmra.mrb[8].mxu0 %vm128_vm1, %v419_v9  ;;  %390 = vmatmul.mubr.msk.bf16.gmra.mrb[8].mxu1 %vm128_vm1, %v420_v10 }
  0x23   :  { %369 = vmatprep.mubr.msk.bf16.mxu0 %vm427_vm0, %v426_v0  ;;  %393 = vmatprep.mubr.msk.bf16.mxu1 %vm427_vm0, %v426_v0 }
  0x2a   :  { %370 = vmatmul.mubr.msk.bf16.gmra.mrb[12].mxu0 %vm128_vm1, %v421_v11  ;;  %394 = vmatmul.mubr.msk.bf16.gmra.mrb[12].mxu1 %vm128_vm1, %v422_v12 }
  0x2b   :  { %373 = vmatprep.mubr.msk.bf16.mxu0 %vm427_vm0, %v426_v0  ;;  %397 = vmatprep.mubr.msk.bf16.mxu1 %vm427_vm0, %v426_v0 }
  0x32   :  { %374 = vmatmul.mubr.msk.bf16.gmra.mrb[16].mxu0 %vm128_vm1, %v423_v13  ;;  %398 = vmatmul.mubr.msk.bf16.gmra.mrb[16].mxu1 %vm128_vm1, %v424_v14 }
  0x33   :  { %377 = vmatprep.mubr.msk.bf16.mxu0 %vm427_vm0, %v426_v0 }
  0x3a   :  { %378 = vmatmul.mubr.msk.bf16.gmra.mrb[20].mxu0 %vm128_vm1, %v425_v15 }
  0xe5   :  { %v196_v17 = vpop.f32.mrb[0].mxu0  ;;  %v244_v18 = vpop.f32.mrb[0].mxu1 }
  0xe6   :  { %v197_v19 = vadd.f32 %v518_v16, %v196_v17  ;;  %v359_v20 = vpop.f32.mrb[1].mxu0  ;;  %v245_v21 = vadd.f32 %v518_v16, %v244_v18  ;;  %v383_v22 = vpop.f32.mrb[1].mxu1 }
  0xe7   :  { %v199_v23 = vpop.f32.mrb[2].mxu0  ;;  %v247_v24 = vpop.f32.mrb[2].mxu1 }
  0xe8   :  { %282 = vst [vmem:[%s607_s3] sm:$0xff] %v197_v19  ;;  %v200_v25 = vadd.f32 %v518_v16, %v199_v23  ;;  %v360_v26 = vpop.f32.mrb[3].mxu0  ;;  %294 = vst [vmem:[%s607_s3 + $0x60] sm:$0xff] %v245_v21  ;;  %v248_v27 = vadd.f32 %v518_v16, %v247_v24  ;;  %v384_v28 = vpop.f32.mrb[3].mxu1 }
  0xea   :  { %283 = vst [vmem:[%s607_s3 + $0x8] sm:$0xff] %v200_v25  ;;  %295 = vst [vmem:[%s607_s3 + $0x68] sm:$0xff] %v248_v27 }
  0xed   :  { %v204_v29 = vpop.f32.mrb[4].mxu0  ;;  %v252_v30 = vpop.f32.mrb[4].mxu1 }
  0xee   :  { %v205_v31 = vadd.f32 %v518_v16, %v204_v29  ;;  %v363_v32 = vpop.f32.mrb[5].mxu0  ;;  %v253_v33 = vadd.f32 %v518_v16, %v252_v30  ;;  %v387_v34 = vpop.f32.mrb[5].mxu1 }
  0xef   :  { %v207_v35 = vpop.f32.mrb[6].mxu0  ;;  %v255_v36 = vpop.f32.mrb[6].mxu1 }
  0xf0   :  { %284 = vst [vmem:[%s607_s3 + $0x10] sm:$0xff] %v205_v31  ;;  %v208_v37 = vadd.f32 %v518_v16, %v207_v35  ;;  %v364_v38 = vpop.f32.mrb[7].mxu0  ;;  %296 = vst [vmem:[%s607_s3 + $0x70] sm:$0xff] %v253_v33  ;;  %v256_v39 = vadd.f32 %v518_v16, %v255_v36  ;;  %v388_v40 = vpop.f32.mrb[7].mxu1 }
  0xf2   :  { %285 = vst [vmem:[%s607_s3 + $0x18] sm:$0xff] %v208_v37  ;;  %297 = vst [vmem:[%s607_s3 + $0x78] sm:$0xff] %v256_v39 }
  0xf5   :  { %v212_v41 = vpop.f32.mrb[8].mxu0  ;;  %v260_v42 = vpop.f32.mrb[8].mxu1 }
  0xf6   :  { %v213_v43 = vadd.f32 %v518_v16, %v212_v41  ;;  %v367_v44 = vpop.f32.mrb[9].mxu0  ;;  %v261_v45 = vadd.f32 %v518_v16, %v260_v42  ;;  %v391_v46 = vpop.f32.mrb[9].mxu1 }
  0xf7   :  { %v215_v47 = vpop.f32.mrb[10].mxu0  ;;  %v263_v48 = vpop.f32.mrb[10].mxu1 }
  0xf8   :  { %286 = vst [vmem:[%s607_s3 + $0x20] sm:$0xff] %v213_v43  ;;  %v216_v49 = vadd.f32 %v518_v16, %v215_v47  ;;  %v368_v50 = vpop.f32.mrb[11].mxu0  ;;  %298 = vst [vmem:[%s607_s3 + $0x80] sm:$0xff] %v261_v45  ;;  %v264_v51 = vadd.f32 %v518_v16, %v263_v48  ;;  %v392_v52 = vpop.f32.mrb[11].mxu1 }
  0xfa   :  { %287 = vst [vmem:[%s607_s3 + $0x28] sm:$0xff] %v216_v49  ;;  %299 = vst [vmem:[%s607_s3 + $0x88] sm:$0xff] %v264_v51 }
  0xfd   :  { %v220_v53 = vpop.f32.mrb[12].mxu0  ;;  %v268_v54 = vpop.f32.mrb[12].mxu1 }
  0xfe   :  { %v221_v55 = vadd.f32 %v518_v16, %v220_v53  ;;  %v371_v56 = vpop.f32.mrb[13].mxu0  ;;  %v269_v57 = vadd.f32 %v518_v16, %v268_v54  ;;  %v395_v58 = vpop.f32.mrb[13].mxu1 }
  0xff   :  { %v223_v59 = vpop.f32.mrb[14].mxu0  ;;  %v271_v60 = vpop.f32.mrb[14].mxu1 }
 0x100   :  { %288 = vst [vmem:[%s607_s3 + $0x30] sm:$0xff] %v221_v55  ;;  %v224_v61 = vadd.f32 %v518_v16, %v223_v59  ;;  %v372_v62 = vpop.f32.mrb[15].mxu0  ;;  %300 = vst [vmem:[%s607_s3 + $0x90] sm:$0xff] %v269_v57  ;;  %v272_v63 = vadd.f32 %v518_v16, %v271_v60  ;;  %v396_v0 = vpop.f32.mrb[15].mxu1 }
 0x102   :  { %289 = vst [vmem:[%s607_s3 + $0x38] sm:$0xff] %v224_v61  ;;  %301 = vst [vmem:[%s607_s3 + $0x98] sm:$0xff] %v272_v63 }
 0x105   :  { %v228_v1 = vpop.f32.mrb[16].mxu0  ;;  %v276_v2 = vpop.f32.mrb[16].mxu1 }
 0x106   :  { %v229_v3 = vadd.f32 %v518_v16, %v228_v1  ;;  %v375_v4 = vpop.f32.mrb[17].mxu0  ;;  %v277_v5 = vadd.f32 %v518_v16, %v276_v2  ;;  %v399_v6 = vpop.f32.mrb[17].mxu1 }
 0x107   :  { %v231_v7 = vpop.f32.mrb[18].mxu0  ;;  %v279_v8 = vpop.f32.mrb[18].mxu1 }
 0x108   :  { %290 = vst [vmem:[%s607_s3 + $0x40] sm:$0xff] %v229_v3  ;;  %v232_v9 = vadd.f32 %v518_v16, %v231_v7  ;;  %v376_v10 = vpop.f32.mrb[19].mxu0  ;;  %302 = vst [vmem:[%s607_s3 + $0xa0] sm:$0xff] %v277_v5  ;;  %v400_v11 = vpop.f32.mrb[19].mxu1 }
 0x10a   :  { %291 = vst [vmem:[%s607_s3 + $0x48] sm:$0xff] %v232_v9 }
 0x10d   :  { %v236_v12 = vpop.f32.mrb[20].mxu0 }
 0x10e   :  { %v237_v13 = vadd.f32 %v518_v16, %v236_v12  ;;  %v379_v14 = vpop.f32.mrb[21].mxu0 }
 0x10f   :  { %v239_v15 = vpop.f32.mrb[22].mxu0 }
 0x110   :  { %292 = vst [vmem:[%s607_s3 + $0x50] sm:$0xff] %v237_v13  ;;  %v240_v17 = vadd.f32 %v518_v16, %v239_v15  ;;  %v380_v18 = vpop.f32.mrb[23].mxu0 }
 0x112   :  { %293 = vst [vmem:[%s607_s3 + $0x58] sm:$0xff] %v240_v17 }

</bundles_post_ra>
